<compile_context>
chip_gen: v7x
topology: tpu7x:2x2x1
jax: 0.10.0
libtpu: 0.0.40
codegen_flags: <defaults>
</compile_context>

<pallas_src>
import jax
import jax.numpy as jnp
from jax.experimental import pallas as pl
from jax.experimental.pallas import tpu as pltpu


# -----------------------------------------------------------------------------
# Pallas kernel: full 2-layer LSTM recurrence + final linear head, all in VMEM.
# -----------------------------------------------------------------------------
def stacked_lstm_kernel(x_ref,                       # (T, B, IN)  f32
                        wih0_ref, whh0_ref, b0_ref,  # (IN,4H) (H,4H) (1,4H)  [g cols pre-scaled x2]
                        w1f_ref, b1_ref,             # (2H,4H) (1,4H)         [g cols pre-scaled x2]
                        wfc_ref, bfc_ref,            # (1,H) (1,1)
                        out_ref,                     # (B, 1)
                        xg_ref):                     # VMEM scratch (T, B, 4H)
    T, B, IN = x_ref.shape
    H = whh0_ref.shape[0]
    G = 4 * H

    # ---- Hoist layer-0 input projection (+ bias) out of the recurrence (VPU only). ----
    x = x_ref[...]                                     # (T, B, IN)
    w0 = wih0_ref[...]                                 # (IN, 4H)
    xg = jnp.broadcast_to(b0_ref[...], (T, B, G)).astype(jnp.float32)
    for i in range(IN):                                # IN is tiny (default 1): outer product
        xg = xg + x[:, :, i:i + 1] * w0[i:i + 1, :]    # (T,B,1)*(1,4H) -> (T,B,4H)
    xg_ref[...] = xg

    # Hoist the layer-1 bias broadcast out of the loop.
    b1b = jnp.broadcast_to(b1_ref[...], (B, G))

    def cell_update(gates, c_prev):
        # g-gate columns of `gates` carry 2*g_raw by construction, so
        # tanh(g_raw) == 2*sigmoid(gates_g) - 1  -> a single full-width sigmoid.
        s = jax.nn.sigmoid(gates)                      # (B, 4H), one EUP pass
        i = s[:, 0 * H:1 * H]
        f = s[:, 1 * H:2 * H]
        g = 2.0 * s[:, 2 * H:3 * H] - 1.0
        o = s[:, 3 * H:4 * H]
        c = f * c_prev + i * g
        h = o * jnp.tanh(c)
        return h, c

    def body(t, carry):
        h0, c0, h1, c1 = carry
        # Layer 0: only the recurrent matmul remains on the per-step critical path.
        g0 = xg_ref[t] + jnp.dot(h0, whh0_ref[...],
                                 preferred_element_type=jnp.float32)
        h0n, c0n = cell_update(g0, c0)
        # Layer 1: fused input+recurrent matmul (inter-layer dropout is identity in eval).
        hcat = jnp.concatenate([h0n, h1], axis=-1)     # (B, 2H)
        g1 = jnp.dot(hcat, w1f_ref[...],
                     preferred_element_type=jnp.float32) + b1b
        h1n, c1n = cell_update(g1, c1)
        return (h0n, c0n, h1n, c1n)

    init = tuple(jnp.zeros((B, H), jnp.float32) for _ in range(4))
    _, _, h1_last, _ = jax.lax.fori_loop(0, T, body, init, unroll=True)

    # Final linear head on the last timestep: (B,H)@(H,1) done as VPU mul + XLU reduce.
    out_ref[...] = (jnp.sum(h1_last * wfc_ref[...], axis=-1, keepdims=True)
                    + bfc_ref[...])


# -----------------------------------------------------------------------------
# Parameter preprocessing for the kernel (done once, outside the kernel).
# -----------------------------------------------------------------------------
def prepare_kernel_params(params):
    H = params["whh0"].shape[0]

    def scale_g(w):
        # Scale the g (cell-candidate) gate columns by 2 so the kernel can use
        # tanh(x) = 2*sigmoid(2x) - 1 with a single full-width sigmoid.
        return w.at[..., 2 * H:3 * H].multiply(2.0)

    w1f = jnp.concatenate([params["wih1"], params["whh1"]], axis=0)   # (2H, 4H)
    return dict(
        wih0=scale_g(params["wih0"]),
        whh0=scale_g(params["whh0"]),
        b0=scale_g(params["b0"]),
        w1f=scale_g(w1f),
        b1=scale_g(params["b1"]),
        wfc_t=params["wfc"].T,        # (1, H) for the VPU-reduction head
        bfc=params["bfc"],
    )


def stacked_lstm_forward(x, params):
    """x: (B, T, IN) float32. Returns (B, 1) float32 (eval-mode forward)."""
    B, T, IN = x.shape
    H = params["whh0"].shape[0]

    kp = prepare_kernel_params(params)
    x_tbi = jnp.transpose(x, (1, 0, 2))                # (T, B, IN) time-major

    vmem = pl.BlockSpec(memory_space=pltpu.MemorySpace.VMEM)
    return pl.pallas_call(
        stacked_lstm_kernel,
        out_shape=jax.ShapeDtypeStruct((B, 1), jnp.float32),
        in_specs=[vmem] * 8,
        out_specs=vmem,
        scratch_shapes=[pltpu.VMEM((T, B, 4 * H), jnp.float32)],
    )(x_tbi,
      kp["wih0"], kp["whh0"], kp["b0"],
      kp["w1f"], kp["b1"],
      kp["wfc_t"], kp["bfc"])


# -----------------------------------------------------------------------------
# Deterministic parameter init (PyTorch-style U(-1/sqrt(H), 1/sqrt(H))).
# -----------------------------------------------------------------------------
def init_params(key, input_size=1, hidden_size=64):
    H = hidden_size
    bound = 1.0 / jnp.sqrt(jnp.float32(H))
    keys = jax.random.split(key, 12)

    def u(k, shape):
        return jax.random.uniform(k, shape, jnp.float32, -bound, bound)

    # Layer 0 (input_size -> H); weights stored transposed: (in, 4H), gate order [i,f,g,o]
    wih0 = u(keys[0], (input_size, 4 * H))
    whh0 = u(keys[1], (H, 4 * H))
    b0 = u(keys[2], (1, 4 * H)) + u(keys[3], (1, 4 * H))   # b_ih + b_hh combined
    # Layer 1 (H -> H)
    wih1 = u(keys[4], (H, 4 * H))
    whh1 = u(keys[5], (H, 4 * H))
    b1 = u(keys[6], (1, 4 * H)) + u(keys[7], (1, 4 * H))
    # FC head (H -> 1)
    wfc = u(keys[8], (H, 1))
    bfc = u(keys[9], (1, 1))
    return dict(wih0=wih0, whh0=whh0, b0=b0,
                wih1=wih1, whh1=whh1, b1=b1,
                wfc=wfc, bfc=bfc)


# -----------------------------------------------------------------------------
# Pure-JAX reference (standard LSTM formulation, original params) for validation.
# -----------------------------------------------------------------------------
def reference_forward(x, params):
    B, T, IN = x.shape
    H = params["whh0"].shape[0]

    def cell(gates, c_prev):
        i = jax.nn.sigmoid(gates[:, 0 * H:1 * H])
        f = jax.nn.sigmoid(gates[:, 1 * H:2 * H])
        g = jnp.tanh(gates[:, 2 * H:3 * H])
        o = jax.nn.sigmoid(gates[:, 3 * H:4 * H])
        c = f * c_prev + i * g
        return o * jnp.tanh(c), c

    def step(carry, x_t):
        h0, c0, h1, c1 = carry
        g0 = x_t @ params["wih0"] + h0 @ params["whh0"] + params["b0"]
        h0, c0 = cell(g0, c0)
        g1 = h0 @ params["wih1"] + h1 @ params["whh1"] + params["b1"]
        h1, c1 = cell(g1, c1)
        return (h0, c0, h1, c1), None

    init = tuple(jnp.zeros((B, H), jnp.float32) for _ in range(4))
    (h0, c0, h1, c1), _ = jax.lax.scan(step, init, jnp.transpose(x, (1, 0, 2)))
    return h1 @ params["wfc"] + params["bfc"]


if __name__ == "__main__":
    B, T, IN, H = 2, 8, 1, 64   # module defaults: input_size=1, hidden_size=64, num_layers=2

    key = jax.random.PRNGKey(0)
    k_x, k_p = jax.random.split(key)
    x = jax.random.normal(k_x, (B, T, IN), jnp.float32)
    params = init_params(k_p, input_size=IN, hidden_size=H)

    out = jax.block_until_ready(stacked_lstm_forward(x, params))
    ref = jax.block_until_ready(reference_forward(x, params))

    assert out.shape == (B, 1)
    assert jnp.allclose(out, ref, rtol=1e-3, atol=1e-3), (out, ref)

    print("KERNEL_OK")
</pallas_src>

<mosaic_0001>
module attributes {stable_mosaic.version = 11 : i64} {
  func.func @stacked_lstm_kernel(%arg0: memref<8x2x1xf32, #tpu.memory_space<vmem>>, %arg1: memref<1x256xf32, #tpu.memory_space<vmem>>, %arg2: memref<64x256xf32, #tpu.memory_space<vmem>>, %arg3: memref<1x256xf32, #tpu.memory_space<vmem>>, %arg4: memref<128x256xf32, #tpu.memory_space<vmem>>, %arg5: memref<1x256xf32, #tpu.memory_space<vmem>>, %arg6: memref<1x64xf32, #tpu.memory_space<vmem>>, %arg7: memref<1x1xf32, #tpu.memory_space<vmem>>, %arg8: memref<2x1xf32, #tpu.memory_space<vmem>>, %arg9: memref<8x2x256xf32, #tpu.memory_space<vmem>>) attributes {dimension_semantics = [], scalar_prefetch = 0 : i64, scratch_operands = 1 : i64, tpu.core_type = #tpu.core_type<tc>} {
    %c0 = arith.constant 0 : index
    %c0_0 = arith.constant 0 : index
    %c0_1 = arith.constant 0 : index
    %0 = vector.load %arg0[%c0, %c0_0, %c0_1] : memref<8x2x1xf32, #tpu.memory_space<vmem>>, vector<8x2x1xf32>
    %c0_2 = arith.constant 0 : index
    %c0_3 = arith.constant 0 : index
    %1 = vector.load %arg1[%c0_2, %c0_3] : memref<1x256xf32, #tpu.memory_space<vmem>>, vector<1x256xf32>
    %c0_4 = arith.constant 0 : index
    %c0_5 = arith.constant 0 : index
    %2 = vector.load %arg3[%c0_4, %c0_5] : memref<1x256xf32, #tpu.memory_space<vmem>>, vector<1x256xf32>
    %3 = vector.shape_cast %2 : vector<1x256xf32> to vector<1x1x256xf32>
    %4 = vector.broadcast %3 : vector<1x1x256xf32> to vector<8x2x256xf32>
    %5 = vector.shape_cast %1 : vector<1x256xf32> to vector<1x1x256xf32>
    %6 = vector.broadcast %0 : vector<8x2x1xf32> to vector<8x2x256xf32>
    %7 = vector.broadcast %5 : vector<1x1x256xf32> to vector<8x2x256xf32>
    %8 = arith.mulf %6, %7 : vector<8x2x256xf32>
    %9 = arith.addf %4, %8 : vector<8x2x256xf32>
    %c0_6 = arith.constant 0 : index
    %c0_7 = arith.constant 0 : index
    %c0_8 = arith.constant 0 : index
    %10 = vector.load %arg9[%c0_6, %c0_7, %c0_8] : memref<8x2x256xf32, #tpu.memory_space<vmem>>, vector<8x2x256xf32>
    tpu.vector_store %arg9[%c0_6, %c0_7, %c0_8], %9 {strides = array<i32>} : memref<8x2x256xf32, #tpu.memory_space<vmem>>, vector<8x2x256xf32>,
    %c0_9 = arith.constant 0 : index
    %c0_10 = arith.constant 0 : index
    %11 = vector.load %arg5[%c0_9, %c0_10] : memref<1x256xf32, #tpu.memory_space<vmem>>, vector<1x256xf32>
    %12 = vector.shape_cast %11 : vector<1x256xf32> to vector<1x256xf32>
    %13 = vector.broadcast %12 : vector<1x256xf32> to vector<2x256xf32>
    %cst = arith.constant 0.000000e+00 : f32
    %14 = vector.broadcast %cst : f32 to vector<2x64xf32>
    %cst_11 = arith.constant 0.000000e+00 : f32
    %15 = vector.broadcast %cst_11 : f32 to vector<2x64xf32>
    %cst_12 = arith.constant 0.000000e+00 : f32
    %16 = vector.broadcast %cst_12 : f32 to vector<2x64xf32>
    %cst_13 = arith.constant 0.000000e+00 : f32
    %17 = vector.broadcast %cst_13 : f32 to vector<2x64xf32>
    %c0_i32 = arith.constant 0 : i32
    %18 = arith.index_cast %c0_i32 : i32 to index
    %c0_14 = arith.constant 0 : index
    %c0_15 = arith.constant 0 : index
    %19 = vector.load %arg9[%18, %c0_14, %c0_15] : memref<8x2x256xf32, #tpu.memory_space<vmem>>, vector<1x2x256xf32>
    %20 = vector.shape_cast %19 : vector<1x2x256xf32> to vector<2x256xf32>
    %c0_16 = arith.constant 0 : index
    %c0_17 = arith.constant 0 : index
    %21 = vector.load %arg2[%c0_16, %c0_17] : memref<64x256xf32, #tpu.memory_space<vmem>>, vector<64x256xf32>
    %cst_18 = arith.constant dense<0.000000e+00> : vector<2x256xf32>
    %22 = tpu.matmul %14, %21, %cst_18 {dimension_numbers = #tpu.dot_dimension_numbers<[1], [0], [0], [1], [0, 0, 1, 1], [], []>} : vector<2x64xf32>, vector<64x256xf32>, vector<2x256xf32> -> vector<2x256xf32>
    %23 = arith.addf %20, %22 : vector<2x256xf32>
    %24 = arith.negf %23 : vector<2x256xf32>
    %25 = math.exp %24 : vector<2x256xf32>
    %cst_19 = arith.constant 1.000000e+00 : f32
    %26 = vector.broadcast %cst_19 : f32 to vector<2x256xf32>
    %27 = arith.addf %26, %25 : vector<2x256xf32>
    %28 = arith.divf %26, %27 : vector<2x256xf32>
    %29 = vector.extract_strided_slice %28 {offsets = [0, 0], sizes = [2, 64], strides = [1, 1]} : vector<2x256xf32> to vector<2x64xf32>
    %30 = vector.extract_strided_slice %28 {offsets = [0, 64], sizes = [2, 64], strides = [1, 1]} : vector<2x256xf32> to vector<2x64xf32>
    %31 = vector.extract_strided_slice %28 {offsets = [0, 128], sizes = [2, 64], strides = [1, 1]} : vector<2x256xf32> to vector<2x64xf32>
    %cst_20 = arith.constant 2.000000e+00 : f32
    %32 = vector.broadcast %cst_20 : f32 to vector<2x64xf32>
    %33 = arith.mulf %32, %31 : vector<2x64xf32>
    %cst_21 = arith.constant 1.000000e+00 : f32
    %34 = vector.broadcast %cst_21 : f32 to vector<2x64xf32>
    %35 = arith.subf %33, %34 : vector<2x64xf32>
    %36 = vector.extract_strided_slice %28 {offsets = [0, 192], sizes = [2, 64], strides = [1, 1]} : vector<2x256xf32> to vector<2x64xf32>
    %37 = arith.mulf %30, %15 : vector<2x64xf32>
    %38 = arith.mulf %29, %35 : vector<2x64xf32>
    %39 = arith.addf %37, %38 : vector<2x64xf32>
    %40 = math.tanh %39 : vector<2x64xf32>
    %41 = arith.mulf %36, %40 : vector<2x64xf32>
    %42 = tpu.concatenate %41, %16 in 1 : vector<2x64xf32>, vector<2x64xf32> -> vector<2x128xf32>
    %c0_22 = arith.constant 0 : index
    %c0_23 = arith.constant 0 : index
    %43 = vector.load %arg4[%c0_22, %c0_23] : memref<128x256xf32, #tpu.memory_space<vmem>>, vector<128x256xf32>
    %cst_24 = arith.constant dense<0.000000e+00> : vector<2x256xf32>
    %44 = tpu.matmul %42, %43, %cst_24 {dimension_numbers = #tpu.dot_dimension_numbers<[1], [0], [0], [1], [0, 0, 1, 1], [], []>} : vector<2x128xf32>, vector<128x256xf32>, vector<2x256xf32> -> vector<2x256xf32>
    %45 = arith.addf %44, %13 : vector<2x256xf32>
    %46 = arith.negf %45 : vector<2x256xf32>
    %47 = math.exp %46 : vector<2x256xf32>
    %cst_25 = arith.constant 1.000000e+00 : f32
    %48 = vector.broadcast %cst_25 : f32 to vector<2x256xf32>
    %49 = arith.addf %48, %47 : vector<2x256xf32>
    %50 = arith.divf %48, %49 : vector<2x256xf32>
    %51 = vector.extract_strided_slice %50 {offsets = [0, 0], sizes = [2, 64], strides = [1, 1]} : vector<2x256xf32> to vector<2x64xf32>
    %52 = vector.extract_strided_slice %50 {offsets = [0, 64], sizes = [2, 64], strides = [1, 1]} : vector<2x256xf32> to vector<2x64xf32>
    %53 = vector.extract_strided_slice %50 {offsets = [0, 128], sizes = [2, 64], strides = [1, 1]} : vector<2x256xf32> to vector<2x64xf32>
    %cst_26 = arith.constant 2.000000e+00 : f32
    %54 = vector.broadcast %cst_26 : f32 to vector<2x64xf32>
    %55 = arith.mulf %54, %53 : vector<2x64xf32>
    %cst_27 = arith.constant 1.000000e+00 : f32
    %56 = vector.broadcast %cst_27 : f32 to vector<2x64xf32>
    %57 = arith.subf %55, %56 : vector<2x64xf32>
    %58 = vector.extract_strided_slice %50 {offsets = [0, 192], sizes = [2, 64], strides = [1, 1]} : vector<2x256xf32> to vector<2x64xf32>
    %59 = arith.mulf %52, %17 : vector<2x64xf32>
    %60 = arith.mulf %51, %57 : vector<2x64xf32>
    %61 = arith.addf %59, %60 : vector<2x64xf32>
    %62 = math.tanh %61 : vector<2x64xf32>
    %63 = arith.mulf %58, %62 : vector<2x64xf32>
    %c1_i32 = arith.constant 1 : i32
    %64 = arith.index_cast %c1_i32 : i32 to index
    %c0_28 = arith.constant 0 : index
    %c0_29 = arith.constant 0 : index
    %65 = vector.load %arg9[%64, %c0_28, %c0_29] : memref<8x2x256xf32, #tpu.memory_space<vmem>>, vector<1x2x256xf32>
    %66 = vector.shape_cast %65 : vector<1x2x256xf32> to vector<2x256xf32>
    %c0_30 = arith.constant 0 : index
    %c0_31 = arith.constant 0 : index
    %67 = vector.load %arg2[%c0_30, %c0_31] : memref<64x256xf32, #tpu.memory_space<vmem>>, vector<64x256xf32>
    %cst_32 = arith.constant dense<0.000000e+00> : vector<2x256xf32>
    %68 = tpu.matmul %41, %67, %cst_32 {dimension_numbers = #tpu.dot_dimension_numbers<[1], [0], [0], [1], [0, 0, 1, 1], [], []>} : vector<2x64xf32>, vector<64x256xf32>, vector<2x256xf32> -> vector<2x256xf32>
    %69 = arith.addf %66, %68 : vector<2x256xf32>
    %70 = arith.negf %69 : vector<2x256xf32>
    %71 = math.exp %70 : vector<2x256xf32>
    %cst_33 = arith.constant 1.000000e+00 : f32
    %72 = vector.broadcast %cst_33 : f32 to vector<2x256xf32>
    %73 = arith.addf %72, %71 : vector<2x256xf32>
    %74 = arith.divf %72, %73 : vector<2x256xf32>
    %75 = vector.extract_strided_slice %74 {offsets = [0, 0], sizes = [2, 64], strides = [1, 1]} : vector<2x256xf32> to vector<2x64xf32>
    %76 = vector.extract_strided_slice %74 {offsets = [0, 64], sizes = [2, 64], strides = [1, 1]} : vector<2x256xf32> to vector<2x64xf32>
    %77 = vector.extract_strided_slice %74 {offsets = [0, 128], sizes = [2, 64], strides = [1, 1]} : vector<2x256xf32> to vector<2x64xf32>
    %cst_34 = arith.constant 2.000000e+00 : f32
    %78 = vector.broadcast %cst_34 : f32 to vector<2x64xf32>
    %79 = arith.mulf %78, %77 : vector<2x64xf32>
    %cst_35 = arith.constant 1.000000e+00 : f32
    %80 = vector.broadcast %cst_35 : f32 to vector<2x64xf32>
    %81 = arith.subf %79, %80 : vector<2x64xf32>
    %82 = vector.extract_strided_slice %74 {offsets = [0, 192], sizes = [2, 64], strides = [1, 1]} : vector<2x256xf32> to vector<2x64xf32>
    %83 = arith.mulf %76, %39 : vector<2x64xf32>
    %84 = arith.mulf %75, %81 : vector<2x64xf32>
    %85 = arith.addf %83, %84 : vector<2x64xf32>
    %86 = math.tanh %85 : vector<2x64xf32>
    %87 = arith.mulf %82, %86 : vector<2x64xf32>
    %88 = tpu.concatenate %87, %63 in 1 : vector<2x64xf32>, vector<2x64xf32> -> vector<2x128xf32>
    %c0_36 = arith.constant 0 : index
    %c0_37 = arith.constant 0 : index
    %89 = vector.load %arg4[%c0_36, %c0_37] : memref<128x256xf32, #tpu.memory_space<vmem>>, vector<128x256xf32>
    %cst_38 = arith.constant dense<0.000000e+00> : vector<2x256xf32>
    %90 = tpu.matmul %88, %89, %cst_38 {dimension_numbers = #tpu.dot_dimension_numbers<[1], [0], [0], [1], [0, 0, 1, 1], [], []>} : vector<2x128xf32>, vector<128x256xf32>, vector<2x256xf32> -> vector<2x256xf32>
    %91 = arith.addf %90, %13 : vector<2x256xf32>
    %92 = arith.negf %91 : vector<2x256xf32>
    %93 = math.exp %92 : vector<2x256xf32>
    %cst_39 = arith.constant 1.000000e+00 : f32
    %94 = vector.broadcast %cst_39 : f32 to vector<2x256xf32>
    %95 = arith.addf %94, %93 : vector<2x256xf32>
    %96 = arith.divf %94, %95 : vector<2x256xf32>
    %97 = vector.extract_strided_slice %96 {offsets = [0, 0], sizes = [2, 64], strides = [1, 1]} : vector<2x256xf32> to vector<2x64xf32>
    %98 = vector.extract_strided_slice %96 {offsets = [0, 64], sizes = [2, 64], strides = [1, 1]} : vector<2x256xf32> to vector<2x64xf32>
    %99 = vector.extract_strided_slice %96 {offsets = [0, 128], sizes = [2, 64], strides = [1, 1]} : vector<2x256xf32> to vector<2x64xf32>
    %cst_40 = arith.constant 2.000000e+00 : f32
    %100 = vector.broadcast %cst_40 : f32 to vector<2x64xf32>
    %101 = arith.mulf %100, %99 : vector<2x64xf32>
    %cst_41 = arith.constant 1.000000e+00 : f32
    %102 = vector.broadcast %cst_41 : f32 to vector<2x64xf32>
    %103 = arith.subf %101, %102 : vector<2x64xf32>
    %104 = vector.extract_strided_slice %96 {offsets = [0, 192], sizes = [2, 64], strides = [1, 1]} : vector<2x256xf32> to vector<2x64xf32>
    %105 = arith.mulf %98, %61 : vector<2x64xf32>
    %106 = arith.mulf %97, %103 : vector<2x64xf32>
    %107 = arith.addf %105, %106 : vector<2x64xf32>
    %108 = math.tanh %107 : vector<2x64xf32>
    %109 = arith.mulf %104, %108 : vector<2x64xf32>
    %c2_i32 = arith.constant 2 : i32
    %110 = arith.index_cast %c2_i32 : i32 to index
    %c0_42 = arith.constant 0 : index
    %c0_43 = arith.constant 0 : index
    %111 = vector.load %arg9[%110, %c0_42, %c0_43] : memref<8x2x256xf32, #tpu.memory_space<vmem>>, vector<1x2x256xf32>
    %112 = vector.shape_cast %111 : vector<1x2x256xf32> to vector<2x256xf32>
    %c0_44 = arith.constant 0 : index
    %c0_45 = arith.constant 0 : index
    %113 = vector.load %arg2[%c0_44, %c0_45] : memref<64x256xf32, #tpu.memory_space<vmem>>, vector<64x256xf32>
    %cst_46 = arith.constant dense<0.000000e+00> : vector<2x256xf32>
    %114 = tpu.matmul %87, %113, %cst_46 {dimension_numbers = #tpu.dot_dimension_numbers<[1], [0], [0], [1], [0, 0, 1, 1], [], []>} : vector<2x64xf32>, vector<64x256xf32>, vector<2x256xf32> -> vector<2x256xf32>
    %115 = arith.addf %112, %114 : vector<2x256xf32>
    %116 = arith.negf %115 : vector<2x256xf32>
    %117 = math.exp %116 : vector<2x256xf32>
    %cst_47 = arith.constant 1.000000e+00 : f32
    %118 = vector.broadcast %cst_47 : f32 to vector<2x256xf32>
    %119 = arith.addf %118, %117 : vector<2x256xf32>
    %120 = arith.divf %118, %119 : vector<2x256xf32>
    %121 = vector.extract_strided_slice %120 {offsets = [0, 0], sizes = [2, 64], strides = [1, 1]} : vector<2x256xf32> to vector<2x64xf32>
    %122 = vector.extract_strided_slice %120 {offsets = [0, 64], sizes = [2, 64], strides = [1, 1]} : vector<2x256xf32> to vector<2x64xf32>
    %123 = vector.extract_strided_slice %120 {offsets = [0, 128], sizes = [2, 64], strides = [1, 1]} : vector<2x256xf32> to vector<2x64xf32>
    %cst_48 = arith.constant 2.000000e+00 : f32
    %124 = vector.broadcast %cst_48 : f32 to vector<2x64xf32>
    %125 = arith.mulf %124, %123 : vector<2x64xf32>
    %cst_49 = arith.constant 1.000000e+00 : f32
    %126 = vector.broadcast %cst_49 : f32 to vector<2x64xf32>
    %127 = arith.subf %125, %126 : vector<2x64xf32>
    %128 = vector.extract_strided_slice %120 {offsets = [0, 192], sizes = [2, 64], strides = [1, 1]} : vector<2x256xf32> to vector<2x64xf32>
    %129 = arith.mulf %122, %85 : vector<2x64xf32>
    %130 = arith.mulf %121, %127 : vector<2x64xf32>
    %131 = arith.addf %129, %130 : vector<2x64xf32>
    %132 = math.tanh %131 : vector<2x64xf32>
    %133 = arith.mulf %128, %132 : vector<2x64xf32>
    %134 = tpu.concatenate %133, %109 in 1 : vector<2x64xf32>, vector<2x64xf32> -> vector<2x128xf32>
    %c0_50 = arith.constant 0 : index
    %c0_51 = arith.constant 0 : index
    %135 = vector.load %arg4[%c0_50, %c0_51] : memref<128x256xf32, #tpu.memory_space<vmem>>, vector<128x256xf32>
    %cst_52 = arith.constant dense<0.000000e+00> : vector<2x256xf32>
    %136 = tpu.matmul %134, %135, %cst_52 {dimension_numbers = #tpu.dot_dimension_numbers<[1], [0], [0], [1], [0, 0, 1, 1], [], []>} : vector<2x128xf32>, vector<128x256xf32>, vector<2x256xf32> -> vector<2x256xf32>
    %137 = arith.addf %136, %13 : vector<2x256xf32>
    %138 = arith.negf %137 : vector<2x256xf32>
    %139 = math.exp %138 : vector<2x256xf32>
    %cst_53 = arith.constant 1.000000e+00 : f32
    %140 = vector.broadcast %cst_53 : f32 to vector<2x256xf32>
    %141 = arith.addf %140, %139 : vector<2x256xf32>
    %142 = arith.divf %140, %141 : vector<2x256xf32>
    %143 = vector.extract_strided_slice %142 {offsets = [0, 0], sizes = [2, 64], strides = [1, 1]} : vector<2x256xf32> to vector<2x64xf32>
    %144 = vector.extract_strided_slice %142 {offsets = [0, 64], sizes = [2, 64], strides = [1, 1]} : vector<2x256xf32> to vector<2x64xf32>
    %145 = vector.extract_strided_slice %142 {offsets = [0, 128], sizes = [2, 64], strides = [1, 1]} : vector<2x256xf32> to vector<2x64xf32>
    %cst_54 = arith.constant 2.000000e+00 : f32
    %146 = vector.broadcast %cst_54 : f32 to vector<2x64xf32>
    %147 = arith.mulf %146, %145 : vector<2x64xf32>
    %cst_55 = arith.constant 1.000000e+00 : f32
    %148 = vector.broadcast %cst_55 : f32 to vector<2x64xf32>
    %149 = arith.subf %147, %148 : vector<2x64xf32>
    %150 = vector.extract_strided_slice %142 {offsets = [0, 192], sizes = [2, 64], strides = [1, 1]} : vector<2x256xf32> to vector<2x64xf32>
    %151 = arith.mulf %144, %107 : vector<2x64xf32>
    %152 = arith.mulf %143, %149 : vector<2x64xf32>
    %153 = arith.addf %151, %152 : vector<2x64xf32>
    %154 = math.tanh %153 : vector<2x64xf32>
    %155 = arith.mulf %150, %154 : vector<2x64xf32>
    %c3_i32 = arith.constant 3 : i32
    %156 = arith.index_cast %c3_i32 : i32 to index
    %c0_56 = arith.constant 0 : index
    %c0_57 = arith.constant 0 : index
    %157 = vector.load %arg9[%156, %c0_56, %c0_57] : memref<8x2x256xf32, #tpu.memory_space<vmem>>, vector<1x2x256xf32>
    %158 = vector.shape_cast %157 : vector<1x2x256xf32> to vector<2x256xf32>
    %c0_58 = arith.constant 0 : index
    %c0_59 = arith.constant 0 : index
    %159 = vector.load %arg2[%c0_58, %c0_59] : memref<64x256xf32, #tpu.memory_space<vmem>>, vector<64x256xf32>
    %cst_60 = arith.constant dense<0.000000e+00> : vector<2x256xf32>
    %160 = tpu.matmul %133, %159, %cst_60 {dimension_numbers = #tpu.dot_dimension_numbers<[1], [0], [0], [1], [0, 0, 1, 1], [], []>} : vector<2x64xf32>, vector<64x256xf32>, vector<2x256xf32> -> vector<2x256xf32>
    %161 = arith.addf %158, %160 : vector<2x256xf32>
    %162 = arith.negf %161 : vector<2x256xf32>
    %163 = math.exp %162 : vector<2x256xf32>
    %cst_61 = arith.constant 1.000000e+00 : f32
    %164 = vector.broadcast %cst_61 : f32 to vector<2x256xf32>
    %165 = arith.addf %164, %163 : vector<2x256xf32>
    %166 = arith.divf %164, %165 : vector<2x256xf32>
    %167 = vector.extract_strided_slice %166 {offsets = [0, 0], sizes = [2, 64], strides = [1, 1]} : vector<2x256xf32> to vector<2x64xf32>
    %168 = vector.extract_strided_slice %166 {offsets = [0, 64], sizes = [2, 64], strides = [1, 1]} : vector<2x256xf32> to vector<2x64xf32>
    %169 = vector.extract_strided_slice %166 {offsets = [0, 128], sizes = [2, 64], strides = [1, 1]} : vector<2x256xf32> to vector<2x64xf32>
    %cst_62 = arith.constant 2.000000e+00 : f32
    %170 = vector.broadcast %cst_62 : f32 to vector<2x64xf32>
    %171 = arith.mulf %170, %169 : vector<2x64xf32>
    %cst_63 = arith.constant 1.000000e+00 : f32
    %172 = vector.broadcast %cst_63 : f32 to vector<2x64xf32>
    %173 = arith.subf %171, %172 : vector<2x64xf32>
    %174 = vector.extract_strided_slice %166 {offsets = [0, 192], sizes = [2, 64], strides = [1, 1]} : vector<2x256xf32> to vector<2x64xf32>
    %175 = arith.mulf %168, %131 : vector<2x64xf32>
    %176 = arith.mulf %167, %173 : vector<2x64xf32>
    %177 = arith.addf %175, %176 : vector<2x64xf32>
    %178 = math.tanh %177 : vector<2x64xf32>
    %179 = arith.mulf %174, %178 : vector<2x64xf32>
    %180 = tpu.concatenate %179, %155 in 1 : vector<2x64xf32>, vector<2x64xf32> -> vector<2x128xf32>
    %c0_64 = arith.constant 0 : index
    %c0_65 = arith.constant 0 : index
    %181 = vector.load %arg4[%c0_64, %c0_65] : memref<128x256xf32, #tpu.memory_space<vmem>>, vector<128x256xf32>
    %cst_66 = arith.constant dense<0.000000e+00> : vector<2x256xf32>
    %182 = tpu.matmul %180, %181, %cst_66 {dimension_numbers = #tpu.dot_dimension_numbers<[1], [0], [0], [1], [0, 0, 1, 1], [], []>} : vector<2x128xf32>, vector<128x256xf32>, vector<2x256xf32> -> vector<2x256xf32>
    %183 = arith.addf %182, %13 : vector<2x256xf32>
    %184 = arith.negf %183 : vector<2x256xf32>
    %185 = math.exp %184 : vector<2x256xf32>
    %cst_67 = arith.constant 1.000000e+00 : f32
    %186 = vector.broadcast %cst_67 : f32 to vector<2x256xf32>
    %187 = arith.addf %186, %185 : vector<2x256xf32>
    %188 = arith.divf %186, %187 : vector<2x256xf32>
    %189 = vector.extract_strided_slice %188 {offsets = [0, 0], sizes = [2, 64], strides = [1, 1]} : vector<2x256xf32> to vector<2x64xf32>
    %190 = vector.extract_strided_slice %188 {offsets = [0, 64], sizes = [2, 64], strides = [1, 1]} : vector<2x256xf32> to vector<2x64xf32>
    %191 = vector.extract_strided_slice %188 {offsets = [0, 128], sizes = [2, 64], strides = [1, 1]} : vector<2x256xf32> to vector<2x64xf32>
    %cst_68 = arith.constant 2.000000e+00 : f32
    %192 = vector.broadcast %cst_68 : f32 to vector<2x64xf32>
    %193 = arith.mulf %192, %191 : vector<2x64xf32>
    %cst_69 = arith.constant 1.000000e+00 : f32
    %194 = vector.broadcast %cst_69 : f32 to vector<2x64xf32>
    %195 = arith.subf %193, %194 : vector<2x64xf32>
    %196 = vector.extract_strided_slice %188 {offsets = [0, 192], sizes = [2, 64], strides = [1, 1]} : vector<2x256xf32> to vector<2x64xf32>
    %197 = arith.mulf %190, %153 : vector<2x64xf32>
    %198 = arith.mulf %189, %195 : vector<2x64xf32>
    %199 = arith.addf %197, %198 : vector<2x64xf32>
    %200 = math.tanh %199 : vector<2x64xf32>
    %201 = arith.mulf %196, %200 : vector<2x64xf32>
    %c4_i32 = arith.constant 4 : i32
    %202 = arith.index_cast %c4_i32 : i32 to index
    %c0_70 = arith.constant 0 : index
    %c0_71 = arith.constant 0 : index
    %203 = vector.load %arg9[%202, %c0_70, %c0_71] : memref<8x2x256xf32, #tpu.memory_space<vmem>>, vector<1x2x256xf32>
    %204 = vector.shape_cast %203 : vector<1x2x256xf32> to vector<2x256xf32>
    %c0_72 = arith.constant 0 : index
    %c0_73 = arith.constant 0 : index
    %205 = vector.load %arg2[%c0_72, %c0_73] : memref<64x256xf32, #tpu.memory_space<vmem>>, vector<64x256xf32>
    %cst_74 = arith.constant dense<0.000000e+00> : vector<2x256xf32>
    %206 = tpu.matmul %179, %205, %cst_74 {dimension_numbers = #tpu.dot_dimension_numbers<[1], [0], [0], [1], [0, 0, 1, 1], [], []>} : vector<2x64xf32>, vector<64x256xf32>, vector<2x256xf32> -> vector<2x256xf32>
    %207 = arith.addf %204, %206 : vector<2x256xf32>
    %208 = arith.negf %207 : vector<2x256xf32>
    %209 = math.exp %208 : vector<2x256xf32>
    %cst_75 = arith.constant 1.000000e+00 : f32
    %210 = vector.broadcast %cst_75 : f32 to vector<2x256xf32>
    %211 = arith.addf %210, %209 : vector<2x256xf32>
    %212 = arith.divf %210, %211 : vector<2x256xf32>
    %213 = vector.extract_strided_slice %212 {offsets = [0, 0], sizes = [2, 64], strides = [1, 1]} : vector<2x256xf32> to vector<2x64xf32>
    %214 = vector.extract_strided_slice %212 {offsets = [0, 64], sizes = [2, 64], strides = [1, 1]} : vector<2x256xf32> to vector<2x64xf32>
    %215 = vector.extract_strided_slice %212 {offsets = [0, 128], sizes = [2, 64], strides = [1, 1]} : vector<2x256xf32> to vector<2x64xf32>
    %cst_76 = arith.constant 2.000000e+00 : f32
    %216 = vector.broadcast %cst_76 : f32 to vector<2x64xf32>
    %217 = arith.mulf %216, %215 : vector<2x64xf32>
    %cst_77 = arith.constant 1.000000e+00 : f32
    %218 = vector.broadcast %cst_77 : f32 to vector<2x64xf32>
    %219 = arith.subf %217, %218 : vector<2x64xf32>
    %220 = vector.extract_strided_slice %212 {offsets = [0, 192], sizes = [2, 64], strides = [1, 1]} : vector<2x256xf32> to vector<2x64xf32>
    %221 = arith.mulf %214, %177 : vector<2x64xf32>
    %222 = arith.mulf %213, %219 : vector<2x64xf32>
    %223 = arith.addf %221, %222 : vector<2x64xf32>
    %224 = math.tanh %223 : vector<2x64xf32>
    %225 = arith.mulf %220, %224 : vector<2x64xf32>
    %226 = tpu.concatenate %225, %201 in 1 : vector<2x64xf32>, vector<2x64xf32> -> vector<2x128xf32>
    %c0_78 = arith.constant 0 : index
    %c0_79 = arith.constant 0 : index
    %227 = vector.load %arg4[%c0_78, %c0_79] : memref<128x256xf32, #tpu.memory_space<vmem>>, vector<128x256xf32>
    %cst_80 = arith.constant dense<0.000000e+00> : vector<2x256xf32>
    %228 = tpu.matmul %226, %227, %cst_80 {dimension_numbers = #tpu.dot_dimension_numbers<[1], [0], [0], [1], [0, 0, 1, 1], [], []>} : vector<2x128xf32>, vector<128x256xf32>, vector<2x256xf32> -> vector<2x256xf32>
    %229 = arith.addf %228, %13 : vector<2x256xf32>
    %230 = arith.negf %229 : vector<2x256xf32>
    %231 = math.exp %230 : vector<2x256xf32>
    %cst_81 = arith.constant 1.000000e+00 : f32
    %232 = vector.broadcast %cst_81 : f32 to vector<2x256xf32>
    %233 = arith.addf %232, %231 : vector<2x256xf32>
    %234 = arith.divf %232, %233 : vector<2x256xf32>
    %235 = vector.extract_strided_slice %234 {offsets = [0, 0], sizes = [2, 64], strides = [1, 1]} : vector<2x256xf32> to vector<2x64xf32>
    %236 = vector.extract_strided_slice %234 {offsets = [0, 64], sizes = [2, 64], strides = [1, 1]} : vector<2x256xf32> to vector<2x64xf32>
    %237 = vector.extract_strided_slice %234 {offsets = [0, 128], sizes = [2, 64], strides = [1, 1]} : vector<2x256xf32> to vector<2x64xf32>
    %cst_82 = arith.constant 2.000000e+00 : f32
    %238 = vector.broadcast %cst_82 : f32 to vector<2x64xf32>
    %239 = arith.mulf %238, %237 : vector<2x64xf32>
    %cst_83 = arith.constant 1.000000e+00 : f32
    %240 = vector.broadcast %cst_83 : f32 to vector<2x64xf32>
    %241 = arith.subf %239, %240 : vector<2x64xf32>
    %242 = vector.extract_strided_slice %234 {offsets = [0, 192], sizes = [2, 64], strides = [1, 1]} : vector<2x256xf32> to vector<2x64xf32>
    %243 = arith.mulf %236, %199 : vector<2x64xf32>
    %244 = arith.mulf %235, %241 : vector<2x64xf32>
    %245 = arith.addf %243, %244 : vector<2x64xf32>
    %246 = math.tanh %245 : vector<2x64xf32>
    %247 = arith.mulf %242, %246 : vector<2x64xf32>
    %c5_i32 = arith.constant 5 : i32
    %248 = arith.index_cast %c5_i32 : i32 to index
    %c0_84 = arith.constant 0 : index
    %c0_85 = arith.constant 0 : index
    %249 = vector.load %arg9[%248, %c0_84, %c0_85] : memref<8x2x256xf32, #tpu.memory_space<vmem>>, vector<1x2x256xf32>
    %250 = vector.shape_cast %249 : vector<1x2x256xf32> to vector<2x256xf32>
    %c0_86 = arith.constant 0 : index
    %c0_87 = arith.constant 0 : index
    %251 = vector.load %arg2[%c0_86, %c0_87] : memref<64x256xf32, #tpu.memory_space<vmem>>, vector<64x256xf32>
    %cst_88 = arith.constant dense<0.000000e+00> : vector<2x256xf32>
    %252 = tpu.matmul %225, %251, %cst_88 {dimension_numbers = #tpu.dot_dimension_numbers<[1], [0], [0], [1], [0, 0, 1, 1], [], []>} : vector<2x64xf32>, vector<64x256xf32>, vector<2x256xf32> -> vector<2x256xf32>
    %253 = arith.addf %250, %252 : vector<2x256xf32>
    %254 = arith.negf %253 : vector<2x256xf32>
    %255 = math.exp %254 : vector<2x256xf32>
    %cst_89 = arith.constant 1.000000e+00 : f32
    %256 = vector.broadcast %cst_89 : f32 to vector<2x256xf32>
    %257 = arith.addf %256, %255 : vector<2x256xf32>
    %258 = arith.divf %256, %257 : vector<2x256xf32>
    %259 = vector.extract_strided_slice %258 {offsets = [0, 0], sizes = [2, 64], strides = [1, 1]} : vector<2x256xf32> to vector<2x64xf32>
    %260 = vector.extract_strided_slice %258 {offsets = [0, 64], sizes = [2, 64], strides = [1, 1]} : vector<2x256xf32> to vector<2x64xf32>
    %261 = vector.extract_strided_slice %258 {offsets = [0, 128], sizes = [2, 64], strides = [1, 1]} : vector<2x256xf32> to vector<2x64xf32>
    %cst_90 = arith.constant 2.000000e+00 : f32
    %262 = vector.broadcast %cst_90 : f32 to vector<2x64xf32>
    %263 = arith.mulf %262, %261 : vector<2x64xf32>
    %cst_91 = arith.constant 1.000000e+00 : f32
    %264 = vector.broadcast %cst_91 : f32 to vector<2x64xf32>
    %265 = arith.subf %263, %264 : vector<2x64xf32>
    %266 = vector.extract_strided_slice %258 {offsets = [0, 192], sizes = [2, 64], strides = [1, 1]} : vector<2x256xf32> to vector<2x64xf32>
    %267 = arith.mulf %260, %223 : vector<2x64xf32>
    %268 = arith.mulf %259, %265 : vector<2x64xf32>
    %269 = arith.addf %267, %268 : vector<2x64xf32>
    %270 = math.tanh %269 : vector<2x64xf32>
    %271 = arith.mulf %266, %270 : vector<2x64xf32>
    %272 = tpu.concatenate %271, %247 in 1 : vector<2x64xf32>, vector<2x64xf32> -> vector<2x128xf32>
    %c0_92 = arith.constant 0 : index
    %c0_93 = arith.constant 0 : index
    %273 = vector.load %arg4[%c0_92, %c0_93] : memref<128x256xf32, #tpu.memory_space<vmem>>, vector<128x256xf32>
    %cst_94 = arith.constant dense<0.000000e+00> : vector<2x256xf32>
    %274 = tpu.matmul %272, %273, %cst_94 {dimension_numbers = #tpu.dot_dimension_numbers<[1], [0], [0], [1], [0, 0, 1, 1], [], []>} : vector<2x128xf32>, vector<128x256xf32>, vector<2x256xf32> -> vector<2x256xf32>
    %275 = arith.addf %274, %13 : vector<2x256xf32>
    %276 = arith.negf %275 : vector<2x256xf32>
    %277 = math.exp %276 : vector<2x256xf32>
    %cst_95 = arith.constant 1.000000e+00 : f32
    %278 = vector.broadcast %cst_95 : f32 to vector<2x256xf32>
    %279 = arith.addf %278, %277 : vector<2x256xf32>
    %280 = arith.divf %278, %279 : vector<2x256xf32>
    %281 = vector.extract_strided_slice %280 {offsets = [0, 0], sizes = [2, 64], strides = [1, 1]} : vector<2x256xf32> to vector<2x64xf32>
    %282 = vector.extract_strided_slice %280 {offsets = [0, 64], sizes = [2, 64], strides = [1, 1]} : vector<2x256xf32> to vector<2x64xf32>
    %283 = vector.extract_strided_slice %280 {offsets = [0, 128], sizes = [2, 64], strides = [1, 1]} : vector<2x256xf32> to vector<2x64xf32>
    %cst_96 = arith.constant 2.000000e+00 : f32
    %284 = vector.broadcast %cst_96 : f32 to vector<2x64xf32>
    %285 = arith.mulf %284, %283 : vector<2x64xf32>
    %cst_97 = arith.constant 1.000000e+00 : f32
    %286 = vector.broadcast %cst_97 : f32 to vector<2x64xf32>
    %287 = arith.subf %285, %286 : vector<2x64xf32>
    %288 = vector.extract_strided_slice %280 {offsets = [0, 192], sizes = [2, 64], strides = [1, 1]} : vector<2x256xf32> to vector<2x64xf32>
    %289 = arith.mulf %282, %245 : vector<2x64xf32>
    %290 = arith.mulf %281, %287 : vector<2x64xf32>
    %291 = arith.addf %289, %290 : vector<2x64xf32>
    %292 = math.tanh %291 : vector<2x64xf32>
    %293 = arith.mulf %288, %292 : vector<2x64xf32>
    %c6_i32 = arith.constant 6 : i32
    %294 = arith.index_cast %c6_i32 : i32 to index
    %c0_98 = arith.constant 0 : index
    %c0_99 = arith.constant 0 : index
    %295 = vector.load %arg9[%294, %c0_98, %c0_99] : memref<8x2x256xf32, #tpu.memory_space<vmem>>, vector<1x2x256xf32>
    %296 = vector.shape_cast %295 : vector<1x2x256xf32> to vector<2x256xf32>
    %c0_100 = arith.constant 0 : index
    %c0_101 = arith.constant 0 : index
    %297 = vector.load %arg2[%c0_100, %c0_101] : memref<64x256xf32, #tpu.memory_space<vmem>>, vector<64x256xf32>
    %cst_102 = arith.constant dense<0.000000e+00> : vector<2x256xf32>
    %298 = tpu.matmul %271, %297, %cst_102 {dimension_numbers = #tpu.dot_dimension_numbers<[1], [0], [0], [1], [0, 0, 1, 1], [], []>} : vector<2x64xf32>, vector<64x256xf32>, vector<2x256xf32> -> vector<2x256xf32>
    %299 = arith.addf %296, %298 : vector<2x256xf32>
    %300 = arith.negf %299 : vector<2x256xf32>
    %301 = math.exp %300 : vector<2x256xf32>
    %cst_103 = arith.constant 1.000000e+00 : f32
    %302 = vector.broadcast %cst_103 : f32 to vector<2x256xf32>
    %303 = arith.addf %302, %301 : vector<2x256xf32>
    %304 = arith.divf %302, %303 : vector<2x256xf32>
    %305 = vector.extract_strided_slice %304 {offsets = [0, 0], sizes = [2, 64], strides = [1, 1]} : vector<2x256xf32> to vector<2x64xf32>
    %306 = vector.extract_strided_slice %304 {offsets = [0, 64], sizes = [2, 64], strides = [1, 1]} : vector<2x256xf32> to vector<2x64xf32>
    %307 = vector.extract_strided_slice %304 {offsets = [0, 128], sizes = [2, 64], strides = [1, 1]} : vector<2x256xf32> to vector<2x64xf32>
    %cst_104 = arith.constant 2.000000e+00 : f32
    %308 = vector.broadcast %cst_104 : f32 to vector<2x64xf32>
    %309 = arith.mulf %308, %307 : vector<2x64xf32>
    %cst_105 = arith.constant 1.000000e+00 : f32
    %310 = vector.broadcast %cst_105 : f32 to vector<2x64xf32>
    %311 = arith.subf %309, %310 : vector<2x64xf32>
    %312 = vector.extract_strided_slice %304 {offsets = [0, 192], sizes = [2, 64], strides = [1, 1]} : vector<2x256xf32> to vector<2x64xf32>
    %313 = arith.mulf %306, %269 : vector<2x64xf32>
    %314 = arith.mulf %305, %311 : vector<2x64xf32>
    %315 = arith.addf %313, %314 : vector<2x64xf32>
    %316 = math.tanh %315 : vector<2x64xf32>
    %317 = arith.mulf %312, %316 : vector<2x64xf32>
    %318 = tpu.concatenate %317, %293 in 1 : vector<2x64xf32>, vector<2x64xf32> -> vector<2x128xf32>
    %c0_106 = arith.constant 0 : index
    %c0_107 = arith.constant 0 : index
    %319 = vector.load %arg4[%c0_106, %c0_107] : memref<128x256xf32, #tpu.memory_space<vmem>>, vector<128x256xf32>
    %cst_108 = arith.constant dense<0.000000e+00> : vector<2x256xf32>
    %320 = tpu.matmul %318, %319, %cst_108 {dimension_numbers = #tpu.dot_dimension_numbers<[1], [0], [0], [1], [0, 0, 1, 1], [], []>} : vector<2x128xf32>, vector<128x256xf32>, vector<2x256xf32> -> vector<2x256xf32>
    %321 = arith.addf %320, %13 : vector<2x256xf32>
    %322 = arith.negf %321 : vector<2x256xf32>
    %323 = math.exp %322 : vector<2x256xf32>
    %cst_109 = arith.constant 1.000000e+00 : f32
    %324 = vector.broadcast %cst_109 : f32 to vector<2x256xf32>
    %325 = arith.addf %324, %323 : vector<2x256xf32>
    %326 = arith.divf %324, %325 : vector<2x256xf32>
    %327 = vector.extract_strided_slice %326 {offsets = [0, 0], sizes = [2, 64], strides = [1, 1]} : vector<2x256xf32> to vector<2x64xf32>
    %328 = vector.extract_strided_slice %326 {offsets = [0, 64], sizes = [2, 64], strides = [1, 1]} : vector<2x256xf32> to vector<2x64xf32>
    %329 = vector.extract_strided_slice %326 {offsets = [0, 128], sizes = [2, 64], strides = [1, 1]} : vector<2x256xf32> to vector<2x64xf32>
    %cst_110 = arith.constant 2.000000e+00 : f32
    %330 = vector.broadcast %cst_110 : f32 to vector<2x64xf32>
    %331 = arith.mulf %330, %329 : vector<2x64xf32>
    %cst_111 = arith.constant 1.000000e+00 : f32
    %332 = vector.broadcast %cst_111 : f32 to vector<2x64xf32>
    %333 = arith.subf %331, %332 : vector<2x64xf32>
    %334 = vector.extract_strided_slice %326 {offsets = [0, 192], sizes = [2, 64], strides = [1, 1]} : vector<2x256xf32> to vector<2x64xf32>
    %335 = arith.mulf %328, %291 : vector<2x64xf32>
    %336 = arith.mulf %327, %333 : vector<2x64xf32>
    %337 = arith.addf %335, %336 : vector<2x64xf32>
    %338 = math.tanh %337 : vector<2x64xf32>
    %339 = arith.mulf %334, %338 : vector<2x64xf32>
    %c7_i32 = arith.constant 7 : i32
    %340 = arith.index_cast %c7_i32 : i32 to index
    %c0_112 = arith.constant 0 : index
    %c0_113 = arith.constant 0 : index
    %341 = vector.load %arg9[%340, %c0_112, %c0_113] : memref<8x2x256xf32, #tpu.memory_space<vmem>>, vector<1x2x256xf32>
    %342 = vector.shape_cast %341 : vector<1x2x256xf32> to vector<2x256xf32>
    %c0_114 = arith.constant 0 : index
    %c0_115 = arith.constant 0 : index
    %343 = vector.load %arg2[%c0_114, %c0_115] : memref<64x256xf32, #tpu.memory_space<vmem>>, vector<64x256xf32>
    %cst_116 = arith.constant dense<0.000000e+00> : vector<2x256xf32>
    %344 = tpu.matmul %317, %343, %cst_116 {dimension_numbers = #tpu.dot_dimension_numbers<[1], [0], [0], [1], [0, 0, 1, 1], [], []>} : vector<2x64xf32>, vector<64x256xf32>, vector<2x256xf32> -> vector<2x256xf32>
    %345 = arith.addf %342, %344 : vector<2x256xf32>
    %346 = arith.negf %345 : vector<2x256xf32>
    %347 = math.exp %346 : vector<2x256xf32>
    %cst_117 = arith.constant 1.000000e+00 : f32
    %348 = vector.broadcast %cst_117 : f32 to vector<2x256xf32>
    %349 = arith.addf %348, %347 : vector<2x256xf32>
    %350 = arith.divf %348, %349 : vector<2x256xf32>
    %351 = vector.extract_strided_slice %350 {offsets = [0, 0], sizes = [2, 64], strides = [1, 1]} : vector<2x256xf32> to vector<2x64xf32>
    %352 = vector.extract_strided_slice %350 {offsets = [0, 64], sizes = [2, 64], strides = [1, 1]} : vector<2x256xf32> to vector<2x64xf32>
    %353 = vector.extract_strided_slice %350 {offsets = [0, 128], sizes = [2, 64], strides = [1, 1]} : vector<2x256xf32> to vector<2x64xf32>
    %cst_118 = arith.constant 2.000000e+00 : f32
    %354 = vector.broadcast %cst_118 : f32 to vector<2x64xf32>
    %355 = arith.mulf %354, %353 : vector<2x64xf32>
    %cst_119 = arith.constant 1.000000e+00 : f32
    %356 = vector.broadcast %cst_119 : f32 to vector<2x64xf32>
    %357 = arith.subf %355, %356 : vector<2x64xf32>
    %358 = vector.extract_strided_slice %350 {offsets = [0, 192], sizes = [2, 64], strides = [1, 1]} : vector<2x256xf32> to vector<2x64xf32>
    %359 = arith.mulf %352, %315 : vector<2x64xf32>
    %360 = arith.mulf %351, %357 : vector<2x64xf32>
    %361 = arith.addf %359, %360 : vector<2x64xf32>
    %362 = math.tanh %361 : vector<2x64xf32>
    %363 = arith.mulf %358, %362 : vector<2x64xf32>
    %364 = tpu.concatenate %363, %339 in 1 : vector<2x64xf32>, vector<2x64xf32> -> vector<2x128xf32>
    %c0_120 = arith.constant 0 : index
    %c0_121 = arith.constant 0 : index
    %365 = vector.load %arg4[%c0_120, %c0_121] : memref<128x256xf32, #tpu.memory_space<vmem>>, vector<128x256xf32>
    %cst_122 = arith.constant dense<0.000000e+00> : vector<2x256xf32>
    %366 = tpu.matmul %364, %365, %cst_122 {dimension_numbers = #tpu.dot_dimension_numbers<[1], [0], [0], [1], [0, 0, 1, 1], [], []>} : vector<2x128xf32>, vector<128x256xf32>, vector<2x256xf32> -> vector<2x256xf32>
    %367 = arith.addf %366, %13 : vector<2x256xf32>
    %368 = arith.negf %367 : vector<2x256xf32>
    %369 = math.exp %368 : vector<2x256xf32>
    %cst_123 = arith.constant 1.000000e+00 : f32
    %370 = vector.broadcast %cst_123 : f32 to vector<2x256xf32>
    %371 = arith.addf %370, %369 : vector<2x256xf32>
    %372 = arith.divf %370, %371 : vector<2x256xf32>
    %373 = vector.extract_strided_slice %372 {offsets = [0, 0], sizes = [2, 64], strides = [1, 1]} : vector<2x256xf32> to vector<2x64xf32>
    %374 = vector.extract_strided_slice %372 {offsets = [0, 64], sizes = [2, 64], strides = [1, 1]} : vector<2x256xf32> to vector<2x64xf32>
    %375 = vector.extract_strided_slice %372 {offsets = [0, 128], sizes = [2, 64], strides = [1, 1]} : vector<2x256xf32> to vector<2x64xf32>
    %cst_124 = arith.constant 2.000000e+00 : f32
    %376 = vector.broadcast %cst_124 : f32 to vector<2x64xf32>
    %377 = arith.mulf %376, %375 : vector<2x64xf32>
    %cst_125 = arith.constant 1.000000e+00 : f32
    %378 = vector.broadcast %cst_125 : f32 to vector<2x64xf32>
    %379 = arith.subf %377, %378 : vector<2x64xf32>
    %380 = vector.extract_strided_slice %372 {offsets = [0, 192], sizes = [2, 64], strides = [1, 1]} : vector<2x256xf32> to vector<2x64xf32>
    %381 = arith.mulf %374, %337 : vector<2x64xf32>
    %382 = arith.mulf %373, %379 : vector<2x64xf32>
    %383 = arith.addf %381, %382 : vector<2x64xf32>
    %384 = math.tanh %383 : vector<2x64xf32>
    %385 = arith.mulf %380, %384 : vector<2x64xf32>
    %c8_i32 = arith.constant 8 : i32
    %c0_126 = arith.constant 0 : index
    %c0_127 = arith.constant 0 : index
    %386 = vector.load %arg6[%c0_126, %c0_127] : memref<1x64xf32, #tpu.memory_space<vmem>>, vector<1x64xf32>
    %387 = vector.broadcast %386 : vector<1x64xf32> to vector<2x64xf32>
    %388 = arith.mulf %385, %387 : vector<2x64xf32>
    %cst_128 = arith.constant dense<0.000000e+00> : vector<2xf32>
    %389 = vector.multi_reduction <add>, %388, %cst_128 [1] : vector<2x64xf32> to vector<2xf32>
    %390 = vector.shape_cast %389 : vector<2xf32> to vector<2x1xf32>
    %c0_129 = arith.constant 0 : index
    %c0_130 = arith.constant 0 : index
    %391 = vector.load %arg7[%c0_129, %c0_130] : memref<1x1xf32, #tpu.memory_space<vmem>>, vector<1x1xf32>
    %392 = vector.broadcast %391 : vector<1x1xf32> to vector<2x1xf32>
    %393 = arith.addf %390, %392 : vector<2x1xf32>
    %c0_131 = arith.constant 0 : index
    %c0_132 = arith.constant 0 : index
    %394 = vector.load %arg8[%c0_131, %c0_132] : memref<2x1xf32, #tpu.memory_space<vmem>>, vector<2x1xf32>
    tpu.vector_store %arg8[%c0_131, %c0_132], %393 {strides = array<i32>} : memref<2x1xf32, #tpu.memory_space<vmem>>, vector<2x1xf32>,
    return
  }
}

</mosaic_0001>

<bundles_post_ra>
// kernel: tpu_custom_call.1
= control target key start
LH: loop header
LB: loop body
LE: loop exit
PB: predicated region body
PF: predicated region fallthrough
CT: control target
= control target key end

     0   :  { %s3232_s0 = inlined_call_operand.vmem [shape: f32[8,2,1], index: 0, kind: input, shape index: {}]   ;;  %s3233_s1 = inlined_call_operand.vmem [shape: f32[1,256], index: 1, kind: input, shape index: {}]   ;;  %s3234_s2 = inlined_call_operand.hbm [shape: f32[64,256], index: 2, kind: input, shape index: {}]   ;;  %s3235_s3 = inlined_call_operand.vmem [shape: f32[1,256], index: 3, kind: input, shape index: {}]   ;;  %s3236_s4 = inlined_call_operand.hbm [shape: f32[128,256], index: 4, kind: input, shape index: {}]   ;;  %s3237_s5 = inlined_call_operand.vmem [shape: f32[1,256], index: 5, kind: input, shape index: {}]   ;;  %s3238_s6 = inlined_call_operand.vmem [shape: f32[1,64], index: 6, kind: input, shape index: {}]   ;;  %s3239_s7 = inlined_call_operand.<no memory space> [shape: f32[1,1], index: 7, kind: input, shape index: {}]   ;;  %s3240_s8 = inlined_call_operand.vmem [shape: f32[2,1], index: 8, kind: output, shape index: {}]  }
   0x1   :  { %v13_v0 = vstv %s3239_s7 }
   0x2   :  { %14 = vst [vmem:[#allocation3] sm:$0x1] %v13_v0 }
   0x3   :  { %15 = vsyncpa [#allocation5], 0 }
   0x4   :  { %16 = vsyncpa [#allocation7], 0  ;;  %s2669_s29 = smov [#allocation4]   ;;  %s2621_s11 = scalar_lea.hbm %s3234_s2, 2048 }
   0x5   :  { %s26_s30 = sshll.u32 %s2669_s29, 4  ;;  %p2622_p0 = scmp.ne.s32.totalorder %s3234_s2, %s2621_s11  ;;  %s27_s30 = int_to_ptr.vmem [resolvable:$true] %s26_s30 }
   0x6   :  { %p2625_p1 = scmp.lt.u32.totalorder %s2621_s11, %s3234_s2 }
   0x8   :  { %p2627_p2 = pnand %p2625_p1, %p2622_p0 }
   0xa   :  { %2630 = shalt.err (!%p2627_p2)
}
   0xb   :  { %s2631_s7 = scalar_lea.vmem %s27_s30, 2048  ;;  %p2636_p4 = scmp.lt.s32.totalorder %s27_s30, %s27_s30 }
   0xc   :  { %p2632_p3 = scmp.ne.s32.totalorder %s27_s30, %s2631_s7  ;;  %p2637_p5 = scmp.lt.s32.totalorder %s2631_s7, %s2631_s7 }
   0xe   :  { %p2638_p6 = por %p2637_p5, %p2636_p4 }
  0x10   :  { %p2639_p7 = pnand %p2638_p6, %p2632_p3 }
  0x12   :  { %2642 = shalt.err (!%p2639_p7)
}
  0x13   :  { %s2670_s16 = smov 256   ;;  %s2671_s17 = smov 16  }
  0x14   :  { %32 = dma.hbm_to_vmem [thread:$0]  %s3234_s2, 2048, %s27_s30, [#allocation5], %s2670_s16, %s2670_s16, %s2671_s17  }
  0x15   :  { %s2672_s20 = smov [#allocation6]   ;;  %s2643_s24 = scalar_lea.hbm %s3236_s4, 4096 }
  0x16   :  { %s40_s21 = sshll.u32 %s2672_s20, 4  ;;  %p2644_p8 = scmp.ne.s32.totalorder %s3236_s4, %s2643_s24  ;;  %s41_s21 = int_to_ptr.vmem [resolvable:$true] %s40_s21 }
  0x17   :  { %p2647_p9 = scmp.lt.u32.totalorder %s2643_s24, %s3236_s4 }
  0x19   :  { %p2649_p10 = pnand %p2647_p9, %p2644_p8 }
  0x1b   :  { %2652 = shalt.err (!%p2649_p10)
}
  0x1c   :  { %s2653_s29 = scalar_lea.vmem %s41_s21, 4096  ;;  %p2658_p12 = scmp.lt.s32.totalorder %s41_s21, %s41_s21 }
  0x1d   :  { %p2654_p11 = scmp.ne.s32.totalorder %s41_s21, %s2653_s29  ;;  %p2659_p13 = scmp.lt.s32.totalorder %s2653_s29, %s2653_s29 }
  0x1f   :  { %p2660_p0 = por %p2659_p13, %p2658_p12 }
  0x21   :  { %p2661_p1 = pnand %p2660_p0, %p2654_p11 }
  0x23   :  { %2664 = shalt.err (!%p2661_p1)
}
  0x24   :  { %46 = dma.hbm_to_vmem [thread:$0]  %s3236_s4, 4096, %s41_s21, [#allocation7], %s2670_s16, %s2670_s16, %s2671_s17  }
  0x25   :  { %2665 = dma.done.wait [#allocation5], 2048  }
  0x26   :  { %2666 = vsyncadd [#allocation5], 4294965248 }
  0x27   :  { %2667 = dma.done.wait [#allocation7], 4096  }
  0x28   :  { %2668 = vsyncadd [#allocation7], 4294963200  ;;  %v2673_v1 = vmov 0.0   ;;  %v2674_v2 = vmov 0   ;;  %v273_v3 = vld [vmem:[#allocation4 + $0x8] sm:$0xff]  ;;  %v275_v4 = vld [vmem:[#allocation4 + $0x18] sm:$0xff]  ;;  %v70_v28 = vlaneseq }
  0x29   :  { %356 = vmatprep.mubr.f32.mxu1 %v2673_v1  ;;  %2491 = vset.pattern.permute.xlu0 %v2674_v2  ;;  %v272_v5 = vld [vmem:[#allocation4] sm:$0xff]  ;;  %v2751_v6 = vpack.c.bf16 %v275_v4, %v273_v3  ;;  %v274_v7 = vld [vmem:[#allocation4 + $0x10] sm:$0xff]  ;;  %v277_v8 = vld [vmem:[#allocation4 + $0x28] sm:$0xff]  ;;  %v2675_v44 = vmov 1983009808   ;;  %vm288_vm0 = vcmask 523264  }
  0x2a   :  { %599 = vmatprep.mubr.f32.mxu0 %v2673_v1  ;;  %2492 = vset.pattern.permute.xlu1 %v2674_v2  ;;  %v279_v9 = vld [vmem:[#allocation4 + $0x38] sm:$0xff]  ;;  %v2753_v10 = vpack.c.bf16 %v274_v7, %v272_v5  ;;  %v276_v12 = vld [vmem:[#allocation4 + $0x20] sm:$0xff]  ;;  %v278_v13 = vld [vmem:[#allocation4 + $0x30] sm:$0xff]  ;;  %v71_v29 = vshrl.u32 %v70_v28, 7  ;;  %v367_v45 = vunpack.c.l.s4 %v2675_v44  ;;  %vm2021_vm1 = vcmask 517120  }
  0x2b   :  { %v2755_v11 = vpack.c.bf16 %v279_v9, %v277_v8  ;;  %v281_v14 = vld [vmem:[#allocation4 + $0x48] sm:$0xff]  ;;  %2100 = vmatprep.subr.bf16.mxu1 %v2751_v6  ;;  %v283_v15 = vld [vmem:[#allocation4 + $0x58] sm:$0xff]  ;;  %2148 = vmatprep.subr.bf16.mxu0 %v2751_v6  ;;  %v2760_v16 = vpack.c.bf16 %v278_v13, %v276_v12  ;;  %v280_v18 = vld [vmem:[#allocation4 + $0x40] sm:$0xff]  ;;  %vm2033_vm2 = vcmask 1024  }
  0x2c   :  { %2102 = vmatpush1.bf16.msra.mxu1 %v2753_v10  ;;  %2150 = vmatpush1.bf16.msra.mxu0 %v2753_v10  ;;  %v2764_v17 = vpack.c.bf16 %v283_v15, %v281_v14  ;;  %v282_v19 = vld [vmem:[#allocation4 + $0x50] sm:$0xff]  ;;  %v59_v20 = vld [vmem:[%s3232_s0] sm:$0x3]  ;;  %v285_v21 = vld [vmem:[#allocation4 + $0x68] sm:$0xff]  ;;  %v2788_v30 = vsub.s32 0, %v71_v29  ;;  %v2790_v31 = vsub.s32 1, %v71_v29  ;;  %v368_v46 = vunpack.c.0.s8 %v367_v45 }
  0x2d   :  { %2104 = vmatprep.subr.bf16.mxu1 %v2755_v11  ;;  %2152 = vmatprep.subr.bf16.mxu0 %v2755_v11  ;;  %v287_v22 = vld [vmem:[#allocation4 + $0x78] sm:$0xff]  ;;  %v2771_v23 = vpack.c.bf16 %v282_v19, %v280_v18  ;;  %v284_v25 = vld [vmem:[#allocation4 + $0x60] sm:$0xff]  ;;  %v286_v26 = vld [vmem:[#allocation4 + $0x70] sm:$0xff] }
  0x2e   :  { %82 = vperm.xlu0 %2491, %v59_v20   ;;  %v2775_v24 = vpack.c.bf16 %v287_v22, %v285_v21  ;;  %v2779_v27 = vpack.c.bf16 %v286_v26, %v284_v25  ;;  %v67_v32 = vld [vmem:[%s3233_s1] sm:$0x3]  ;;  %v2814_v48 = vsub.s32 %v368_v46, %v71_v29  ;;  %s2676_s1 = smov 64   ;;  %v60_v62 = vld [vmem:[%s3232_s0 + $0x2] sm:$0x3]  ;;  %v405_v63 = vld [vmem:[#allocation6 + $0x8] sm:$0xff] }
  0x2f   :  { %v68_v33 = vld [vmem:[%s3235_s3] sm:$0x3]  ;;  %v2799_v34 = vrot.slane %v67_v32, %v2788_v30  ;;  %v2802_v35 = vrot.slane %v67_v32, %v2790_v31  ;;  %v406_v4 = vld [vmem:[#allocation6 + $0x10] sm:$0xff]  ;;  %v409_v5 = vld [vmem:[#allocation6 + $0x28] sm:$0xff] }
  0x30   :  { %2106 = vmatpush1.bf16.msra.mxu1 %v2760_v16  ;;  %2154 = vmatpush1.bf16.msra.mxu0 %v2760_v16  ;;  %v2805_v36 = vrot.slane %v68_v33, %v2788_v30  ;;  %v2808_v37 = vrot.slane %v68_v33, %v2790_v31  ;;  %v407_v0 = vld [vmem:[#allocation6 + $0x18] sm:$0xff]  ;;  %v404_v2 = vld [vmem:[#allocation6] sm:$0xff]  ;;  %v410_v13 = vld [vmem:[#allocation6 + $0x30] sm:$0xff] }
  0x31   :  { %2108 = vmatprep.subr.bf16.mxu1 %v2764_v17  ;;  %2156 = vmatprep.subr.bf16.mxu0 %v2764_v17  ;;  %v2827_v3 = vpack.c.bf16 %v407_v0, %v405_v63  ;;  %v411_v7 = vld [vmem:[#allocation6 + $0x38] sm:$0xff]  ;;  %v2829_v8 = vpack.c.bf16 %v406_v4, %v404_v2  ;;  %v408_v12 = vld [vmem:[#allocation6 + $0x20] sm:$0xff]  ;;  %v413_v14 = vld [vmem:[#allocation6 + $0x48] sm:$0xff] }
  0x32   :  { %v2831_v9 = vpack.c.bf16 %v411_v7, %v409_v5  ;;  %v415_v15 = vld [vmem:[#allocation6 + $0x58] sm:$0xff]  ;;  %v2836_v18 = vpack.c.bf16 %v410_v13, %v408_v12  ;;  %v412_v20 = vld [vmem:[#allocation6 + $0x40] sm:$0xff]  ;;  %v414_v21 = vld [vmem:[#allocation6 + $0x50] sm:$0xff] }
  0x33   :  { %v2839_v19 = vpack.c.bf16 %v415_v15, %v413_v14  ;;  %v417_v22 = vld [vmem:[#allocation6 + $0x68] sm:$0xff]  ;;  %v419_v25 = vld [vmem:[#allocation6 + $0x78] sm:$0xff]  ;;  %v2842_v26 = vpack.c.bf16 %v414_v21, %v412_v20  ;;  %v416_v29 = vld [vmem:[#allocation6 + $0x60] sm:$0xff] }
  0x34   :  { %2110 = vmatpush1.bf16.msra.mxu1 %v2771_v23  ;;  %2158 = vmatpush1.bf16.msra.mxu0 %v2771_v23  ;;  %v2845_v28 = vpack.c.bf16 %v419_v25, %v417_v22  ;;  %v418_v32 = vld [vmem:[#allocation6 + $0x70] sm:$0xff]  ;;  %v421_v33 = vld [vmem:[#allocation6 + $0x88] sm:$0xff]  ;;  %v427_v44 = vld [vmem:[#allocation6 + $0xb8] sm:$0xff] }
  0x35   :  { %2112 = vmatprep.subr.bf16.mxu1 %v2775_v24  ;;  %2160 = vmatprep.subr.bf16.mxu0 %v2775_v24 }
  0x38   :  { %2114 = vmatpush1.bf16.msra.mxu1 %v2779_v27  ;;  %2162 = vmatpush1.bf16.msra.mxu0 %v2779_v27 }
  0x39   :  { %2116 = vmatprep.subr.bf16.mxu1 %v2827_v3  ;;  %2164 = vmatprep.subr.bf16.mxu0 %v2827_v3 }
  0x3b   :  { %357 = vmatmul.mubr.f32.vlgmr.msra.gmra.mrb[0].mxu1 %v2673_v1 }
  0x3c   :  { %500 = vmatprep.mubr.f32.mxu1 %v2673_v1  ;;  %2118 = vmatpush1.bf16.msra.mxu1 %v2829_v8 }
  0x3d   :  { %2120 = vmatprep.subr.bf16.mxu1 %v2831_v9 }
  0x40   :  { %2122 = vmatpush1.bf16.msra.mxu1 %v2836_v18 }
  0x41   :  { %2124 = vmatprep.subr.bf16.mxu1 %v2839_v19 }
  0x44   :  { %2126 = vmatpush1.bf16.msra.mxu1 %v2842_v26 }
  0x45   :  { %2128 = vmatprep.subr.bf16.mxu1 %v2845_v28 }
  0xad   :  { %v83_v38 = vpop.permute.xlu0 %82 }
  0xae   :  { %v131_v39 = vmul.f32 %v2799_v34, %v83_v38  ;;  %v132_v40 = vmul.f32 %v2802_v35, %v83_v38  ;;  %v423_v38 = vld [vmem:[#allocation6 + $0x98] sm:$0xff] }
  0xb0   :  { %v147_v41 = vadd.f32 %v131_v39, %v2805_v36  ;;  %v148_v42 = vadd.f32 %v132_v40, %v2808_v37  ;;  %v2848_v39 = vpack.c.bf16 %v418_v32, %v416_v29  ;;  %v2851_v40 = vpack.c.bf16 %v423_v38, %v421_v33  ;;  %v259_v29 = vld [vmem:[%s3237_s5] sm:$0x3] }
  0xb1   :  { %v2918_v32 = vrot.slane %v259_v29, %v2790_v31  ;;  %v2921_v33 = vrot.slane %v259_v29, %v2788_v30 }
  0xb2   :  { %v179_v43 = vcombine.low %v147_v41, %v148_v42  ;;  %v420_v41 = vld [vmem:[#allocation6 + $0x80] sm:$0xff]  ;;  %v422_v42 = vld [vmem:[#allocation6 + $0x90] sm:$0xff]  ;;  %2130 = vmatpush1.bf16.msra.mxu1 %v2848_v39 }
  0xb3   :  { %v2854_v45 = vpack.c.bf16 %v422_v42, %v420_v41  ;;  %2132 = vmatprep.subr.bf16.mxu1 %v2851_v40 }
  0xb4   :  { %2041 = vst.sshfl [vmem:[#allocation2] sm:$0x33 pattern:$0x76325410] %v179_v43  ;;  %v425_v43 = vld [vmem:[#allocation6 + $0xa8] sm:$0xff] }
  0xb5   :  { %v2857_v46 = vpack.c.bf16 %v427_v44, %v425_v43 }
  0xb6   :  { %2134 = vmatpush1.bf16.msra.mxu1 %v2854_v45 }
  0xb7   :  { %2136 = vmatprep.subr.bf16.mxu1 %v2857_v46 }
  0xbb   :  { %v271_v51 = vld [vmem:[#allocation2] sm:$0xf] }
 0x10e   :  { %v358_v47 = vpop.f32.mrb[0].mxu1 }
 0x10f   :  { %v360_v49 = vpop.f32.mrb[1].mxu1 }
 0x110   :  { %v365_v50 = vcombine.low %v358_v47, %v360_v49  ;;  %v424_v47 = vld [vmem:[#allocation6 + $0xa0] sm:$0xff]  ;;  %v426_v49 = vld [vmem:[#allocation6 + $0xb0] sm:$0xff] }
 0x112   :  { %v372_v52 = vrot.slane %v365_v50, %v2814_v48  ;;  %v429_v50 = vld [vmem:[#allocation6 + $0xc8] sm:$0xff] }
 0x114   :  { %v374_v53 = vadd.f32 %v372_v52, %v271_v51  ;;  %v431_v51 = vld [vmem:[#allocation6 + $0xd8] sm:$0xff]  ;;  %v2860_v52 = vpack.c.bf16 %v426_v49, %v424_v47 }
 0x116   :  { %v2049_v54 = vmul.f32 -1.442695, %v374_v53  ;;  %v2863_v53 = vpack.c.bf16 %v431_v51, %v429_v50  ;;  %2138 = vmatpush1.bf16.msra.mxu1 %v2860_v52 }
 0x118   :  { %2493 = vpow2.f32 %v2049_v54  ;;  %v428_v54 = vld [vmem:[#allocation6 + $0xc0] sm:$0xff]  ;;  %2140 = vmatprep.subr.bf16.mxu1 %v2863_v53 }
 0x122   :  { %v2494_v55 = vpop.eup %2493 }
 0x123   :  { %v378_v56 = vadd.f32 1.0, %v2494_v55  ;;  %v430_v55 = vld [vmem:[#allocation6 + $0xd0] sm:$0xff] }
 0x125   :  { %2495 = vrcp.f32 %v378_v56  ;;  %v433_v56 = vld [vmem:[#allocation6 + $0xe8] sm:$0xff] }
 0x12f   :  { %v2817_v57 = vpop.eup %2495 }
 0x130   :  { %394 = vrot.lane.b32.xlu1 %v2817_v57, %s2676_s1  ;;  %v382_v58 = vrot.slane %v2817_v57, 2  ;;  %v386_v0 = vmul.f32 0.0, %v2817_v57 }
 0x132   :  { %v384_v59 = vmul.f32 2.0, %v382_v58  ;;  %v435_v58 = vld [vmem:[#allocation6 + $0xf8] sm:$0xff] }
 0x134   :  { %v2050_v60 = vadd.f32 -1.0, %v384_v59  ;;  %v2866_v59 = vpack.c.bf16 %v430_v55, %v428_v54 }
 0x136   :  { %v387_v61 = vmul.f32 %v2817_v57, %v2050_v60  ;;  %v2869_v60 = vpack.c.bf16 %v435_v58, %v433_v56  ;;  %2142 = vmatpush1.bf16.msra.mxu1 %v2866_v59 }
 0x138   :  { %389 = vrot.lane.b32.xlu0 %v387_v61, %s2676_s1  ;;  %v432_v61 = vld [vmem:[#allocation6 + $0xe0] sm:$0xff]  ;;  %2144 = vmatprep.subr.bf16.mxu1 %v2869_v60 }
 0x13c   :  { %87 = vperm.xlu0 %2491, %v60_v62   ;;  %v434_v62 = vld [vmem:[#allocation6 + $0xf0] sm:$0xff] }
 0x13d   :  { %v2872_v63 = vpack.c.bf16 %v434_v62, %v432_v61 }
 0x13f   :  { %2146 = vmatpush1.bf16.msra.mxu1 %v2872_v63 }
 0x140   :  { %2196 = vmatprep.subr.bf16.mxu1 %v2751_v6 }
 0x1a2   :  { %v395_v57 = vpop.permute.xlu1 %394 }
 0x1a3   :  { %v396_v21 = vrot.slane %v395_v57, 2 }
 0x1aa   :  { %v390_v2 = vpop.permute.xlu0 %389 }
 0x1ab   :  { %v2878_v4 = vadd.f32 %v390_v2, %v386_v0 }
 0x1ad   :  { %2497 = vtanh.f32 %v2878_v4 }
 0x1b7   :  { %v2498_v5 = vpop.eup %2497 }
 0x1b8   :  { %399 = vrot.lane.b32.xlu1 %v2498_v5, %s2676_s1 }
 0x1bb   :  { %v88_v7 = vpop.permute.xlu0 %87 }
 0x1bc   :  { %v133_v12 = vmul.f32 %v2799_v34, %v88_v7  ;;  %v134_v13 = vmul.f32 %v2802_v35, %v88_v7 }
 0x1be   :  { %v149_v14 = vadd.f32 %v133_v12, %v2805_v36  ;;  %v150_v15 = vadd.f32 %v134_v13, %v2808_v37 }
 0x1c0   :  { %v187_v20 = vcombine.low %v149_v14, %v150_v15  ;;  %v61_v14 = vld [vmem:[%s3232_s0 + $0x4] sm:$0x3] }
 0x1c2   :  { %2042 = vst.sshfl [vmem:[#allocation2 + $0x4] sm:$0x33 pattern:$0x76325410] %v187_v20 }
 0x1c9   :  { %v531_v54 = vld [vmem:[#allocation2 + $0x4] sm:$0xf] }
 0x22a   :  { %v400_v22 = vpop.permute.xlu1 %399 }
 0x22b   :  { %v402_v25 = vmul.f32 %v400_v22, %v396_v21 }
 0x22d   :  { %2051 = vmatmul.mubr.msk.f32.vlgmr.msra.gmra.mrb[2].mxu1 %vm288_vm0, %v402_v25  ;;  %2055 = vmatmul.mubr.msk.f32.vlgmr.msra.gmra.mrb[0].mxu0 %vm288_vm0, %v402_v25 }
 0x22e   :  { %2166 = vmatpush1.bf16.msra.mxu0 %v2829_v8  ;;  %2198 = vmatpush1.bf16.msra.mxu1 %v2753_v10 }
 0x22f   :  { %2168 = vmatprep.subr.bf16.mxu0 %v2831_v9  ;;  %2200 = vmatprep.subr.bf16.mxu1 %v2755_v11 }
 0x230   :  { %810 = vmatprep.mubr.f32.mxu1 %v2673_v1  ;;  %711 = vmatprep.mubr.f32.mxu0 %v2673_v1 }
 0x232   :  { %2170 = vmatpush1.bf16.msra.mxu0 %v2836_v18  ;;  %2202 = vmatpush1.bf16.msra.mxu1 %v2760_v16 }
 0x233   :  { %2172 = vmatprep.subr.bf16.mxu0 %v2839_v19  ;;  %2204 = vmatprep.subr.bf16.mxu1 %v2764_v17 }
 0x236   :  { %2174 = vmatpush1.bf16.msra.mxu0 %v2842_v26  ;;  %2206 = vmatpush1.bf16.msra.mxu1 %v2771_v23 }
 0x237   :  { %2176 = vmatprep.subr.bf16.mxu0 %v2845_v28  ;;  %2208 = vmatprep.subr.bf16.mxu1 %v2775_v24 }
 0x23a   :  { %2178 = vmatpush1.bf16.msra.mxu0 %v2848_v39  ;;  %2210 = vmatpush1.bf16.msra.mxu1 %v2779_v27 }
 0x23b   :  { %2180 = vmatprep.subr.bf16.mxu0 %v2851_v40  ;;  %2212 = vmatprep.subr.bf16.mxu1 %v2827_v3 }
 0x23e   :  { %2182 = vmatpush1.bf16.msra.mxu0 %v2854_v45 }
 0x23f   :  { %2184 = vmatprep.subr.bf16.mxu0 %v2857_v46 }
 0x242   :  { %2186 = vmatpush1.bf16.msra.mxu0 %v2860_v52 }
 0x243   :  { %2188 = vmatprep.subr.bf16.mxu0 %v2863_v53 }
 0x246   :  { %2190 = vmatpush1.bf16.msra.mxu0 %v2866_v59 }
 0x247   :  { %2192 = vmatprep.subr.bf16.mxu0 %v2869_v60 }
 0x24a   :  { %2194 = vmatpush1.bf16.msra.mxu0 %v2872_v63 }
 0x24b   :  { %2244 = vmatprep.subr.bf16.mxu0 %v2751_v6 }
 0x300   :  { %v502_v38 = vpop.f32.mrb[2].mxu1  ;;  %v601_v41 = vpop.f32.mrb[0].mxu0 }
 0x301   :  { %v504_v42 = vpop.f32.mrb[3].mxu1  ;;  %v603_v43 = vpop.f32.mrb[1].mxu0  ;;  %v503_v49 = vadd.f32 %v502_v38, %v2921_v33 }
 0x302   :  { %v505_v44 = vadd.f32 %v504_v42, %v2918_v32  ;;  %v608_v47 = vcombine.low %v601_v41, %v603_v43 }
 0x303   :  { %v2052_v31 = vmul.f32 -1.442695, %v503_v49 }
 0x304   :  { %v2053_v50 = vmul.f32 -1.442695, %v505_v44  ;;  %v615_v51 = vrot.slane %v608_v47, %v2814_v48 }
 0x306   :  { %2499 = vpow2.f32 %v2053_v50  ;;  %v617_v55 = vadd.f32 %v615_v51, %v531_v54 }
 0x308   :  { %v2056_v56 = vmul.f32 -1.442695, %v617_v55 }
 0x30a   :  { %2501 = vpow2.f32 %v2056_v56 }
 0x30b   :  { %2503 = vpow2.f32 %v2052_v31 }
 0x310   :  { %v2500_v30 = vpop.eup %2499 }
 0x311   :  { %v514_v58 = vadd.f32 1.0, %v2500_v30 }
 0x313   :  { %2505 = vrcp.f32 %v514_v58 }
 0x314   :  { %v2502_v61 = vpop.eup %2501 }
 0x315   :  { %v621_v62 = vadd.f32 1.0, %v2502_v61  ;;  %v2504_v0 = vpop.eup %2503 }
 0x316   :  { %v513_v2 = vadd.f32 1.0, %v2504_v0 }
 0x317   :  { %2507 = vrcp.f32 %v621_v62 }
 0x318   :  { %2509 = vrcp.f32 %v513_v2 }
 0x31d   :  { %v2506_v5 = vpop.eup %2505 }
 0x31e   :  { %v519_v7 = vmul.f32 2.0, %v2506_v5 }
 0x320   :  { %v2054_v15 = vadd.f32 -1.0, %v519_v7 }
 0x321   :  { %v2508_v12 = vpop.eup %2507 }
 0x322   :  { %637 = vrot.lane.b32.xlu0 %v2508_v12, %s2676_s1  ;;  %v625_v13 = vrot.slane %v2508_v12, 2  ;;  %v2510_v21 = vpop.eup %2509  ;;  %v629_v29 = vmul.f32 %v2508_v12, %v2878_v4 }
 0x323   :  { %v522_v22 = vmul.f32 %v2510_v21, %v2054_v15  ;;  %v521_v55 = vmul.f32 0.0, %v2510_v21 }
 0x324   :  { %v627_v20 = vmul.f32 2.0, %v625_v13 }
 0x326   :  { %92 = vperm.xlu0 %2491, %v61_v14   ;;  %v2057_v57 = vadd.f32 -1.0, %v627_v20 }
 0x328   :  { %v630_v25 = vmul.f32 %v2508_v12, %v2057_v57 }
 0x32a   :  { %524 = vrot.lane.b32.xlu0 %v522_v22, %s2676_s1  ;;  %632 = vrot.lane.b32.xlu1 %v630_v25, %s2676_s1 }
 0x394   :  { %v638_v42 = vpop.permute.xlu0 %637 }
 0x395   :  { %v639_v30 = vrot.slane %v638_v42, 2 }
 0x39c   :  { %v633_v38 = vpop.permute.xlu1 %632 }
 0x39d   :  { %v2933_v41 = vadd.f32 %v633_v38, %v629_v29 }
 0x39f   :  { %2511 = vtanh.f32 %v2933_v41 }
 0x3a5   :  { %v93_v43 = vpop.permute.xlu0 %92 }
 0x3a6   :  { %v135_v44 = vmul.f32 %v2799_v34, %v93_v43  ;;  %v136_v47 = vmul.f32 %v2802_v35, %v93_v43 }
 0x3a8   :  { %v151_v49 = vadd.f32 %v135_v44, %v2805_v36  ;;  %v152_v50 = vadd.f32 %v136_v47, %v2808_v37 }
 0x3a9   :  { %v2512_v51 = vpop.eup %2511  ;;  %v525_v4 = vpop.permute.xlu0 %524 }
 0x3aa   :  { %v195_v54 = vcombine.low %v151_v49, %v152_v50  ;;  %642 = vrot.lane.b32.xlu1 %v2512_v51, %s2676_s1  ;;  %v2941_v31 = vadd.f32 %v525_v4, %v521_v55 }
 0x3ac   :  { %2043 = vst.sshfl [vmem:[#allocation2 + $0x8] sm:$0x33 pattern:$0x76325410] %v195_v54  ;;  %2513 = vtanh.f32 %v2941_v31 }
 0x3b3   :  { %v742_v15 = vld [vmem:[#allocation2 + $0x8] sm:$0xf] }
 0x3b6   :  { %v2514_v56 = vpop.eup %2513 }
 0x3b7   :  { %v529_v62 = vmul.f32 %v2514_v56, %v2506_v5 }
 0x41c   :  { %v643_v58 = vpop.permute.xlu1 %642 }
 0x41d   :  { %v645_v61 = vmul.f32 %v643_v58, %v639_v30 }
 0x41f   :  { %2061 = vmatmul.mubr.msk.f32.vlgmr.msra.gmra.mrb[4].mxu1 %vm288_vm0, %v645_v61  ;;  %v646_v0 = vsel %vm288_vm0, %v645_v61, %v529_v62 }
 0x420   :  { %712 = vmatmul.mubr.f32.vlgmr.msra.gmra.mrb[2].mxu0 %v646_v0  ;;  %2214 = vmatpush1.bf16.msra.mxu1 %v2829_v8 }
 0x421   :  { %2246 = vmatpush1.bf16.msra.mxu0 %v2753_v10  ;;  %2216 = vmatprep.subr.bf16.mxu1 %v2831_v9 }
 0x422   :  { %2248 = vmatprep.subr.bf16.mxu0 %v2755_v11  ;;  %1021 = vmatprep.mubr.f32.mxu0 %v2673_v1 }
 0x423   :  { %922 = vmatprep.mubr.f32.mxu1 %v2673_v1 }
 0x424   :  { %2218 = vmatpush1.bf16.msra.mxu1 %v2836_v18 }
 0x425   :  { %2250 = vmatpush1.bf16.msra.mxu0 %v2760_v16  ;;  %2220 = vmatprep.subr.bf16.mxu1 %v2839_v19 }
 0x426   :  { %2252 = vmatprep.subr.bf16.mxu0 %v2764_v17 }
 0x428   :  { %2222 = vmatpush1.bf16.msra.mxu1 %v2842_v26 }
 0x429   :  { %2254 = vmatpush1.bf16.msra.mxu0 %v2771_v23  ;;  %2224 = vmatprep.subr.bf16.mxu1 %v2845_v28 }
 0x42a   :  { %2256 = vmatprep.subr.bf16.mxu0 %v2775_v24 }
 0x42c   :  { %2226 = vmatpush1.bf16.msra.mxu1 %v2848_v39 }
 0x42d   :  { %2258 = vmatpush1.bf16.msra.mxu0 %v2779_v27  ;;  %2228 = vmatprep.subr.bf16.mxu1 %v2851_v40 }
 0x42e   :  { %2260 = vmatprep.subr.bf16.mxu0 %v2827_v3 }
 0x430   :  { %2230 = vmatpush1.bf16.msra.mxu1 %v2854_v45 }
 0x431   :  { %2232 = vmatprep.subr.bf16.mxu1 %v2857_v46 }
 0x434   :  { %2234 = vmatpush1.bf16.msra.mxu1 %v2860_v52 }
 0x435   :  { %2236 = vmatprep.subr.bf16.mxu1 %v2863_v53 }
 0x438   :  { %2238 = vmatpush1.bf16.msra.mxu1 %v2866_v59 }
 0x439   :  { %2240 = vmatprep.subr.bf16.mxu1 %v2869_v60 }
 0x43c   :  { %2242 = vmatpush1.bf16.msra.mxu1 %v2872_v63 }
 0x43d   :  { %2292 = vmatprep.subr.bf16.mxu1 %v2751_v6 }
 0x4f2   :  { %v812_v2 = vpop.f32.mrb[4].mxu1 }
 0x4f3   :  { %v713_v5 = vpop.f32.mrb[2].mxu0  ;;  %v814_v7 = vpop.f32.mrb[5].mxu1 }
 0x4f4   :  { %v819_v12 = vcombine.low %v812_v2, %v814_v7  ;;  %v715_v13 = vpop.f32.mrb[3].mxu0  ;;  %v714_v49 = vadd.f32 %v713_v5, %v2921_v33 }
 0x4f5   :  { %v716_v44 = vadd.f32 %v715_v13, %v2918_v32 }
 0x4f6   :  { %v826_v14 = vrot.slane %v819_v12, %v2814_v48  ;;  %v2058_v50 = vmul.f32 -1.442695, %v714_v49 }
 0x4f7   :  { %v2059_v47 = vmul.f32 -1.442695, %v716_v44 }
 0x4f8   :  { %v828_v20 = vadd.f32 %v826_v14, %v742_v15 }
 0x4fa   :  { %v2062_v57 = vmul.f32 -1.442695, %v828_v20 }
 0x4fc   :  { %2515 = vpow2.f32 %v2062_v57 }
 0x506   :  { %v2516_v21 = vpop.eup %2515 }
 0x507   :  { %v832_v22 = vadd.f32 1.0, %v2516_v21 }
 0x509   :  { %2517 = vrcp.f32 %v832_v22 }
 0x50a   :  { %2519 = vpow2.f32 %v2059_v47 }
 0x50b   :  { %2521 = vpow2.f32 %v2058_v50 }
 0x513   :  { %v2518_v25 = vpop.eup %2517 }
 0x514   :  { %v836_v29 = vrot.slane %v2518_v25, 2  ;;  %v2520_v51 = vpop.eup %2519  ;;  %v840_v55 = vmul.f32 %v2518_v25, %v2933_v41  ;;  %v62_v41 = vld [vmem:[%s3232_s0 + $0x6] sm:$0x3] }
 0x515   :  { %v725_v54 = vadd.f32 1.0, %v2520_v51  ;;  %v2522_v4 = vpop.eup %2521 }
 0x516   :  { %v838_v38 = vmul.f32 2.0, %v836_v29  ;;  %v724_v30 = vadd.f32 1.0, %v2522_v4 }
 0x517   :  { %2523 = vrcp.f32 %v725_v54 }
 0x518   :  { %v2063_v42 = vadd.f32 -1.0, %v838_v38 }
 0x51a   :  { %v841_v43 = vmul.f32 %v2518_v25, %v2063_v42 }
 0x51c   :  { %843 = vrot.lane.b32.xlu1 %v841_v43, %s2676_s1 }
 0x520   :  { %848 = vrot.lane.b32.xlu1 %v2518_v25, %s2676_s1 }
 0x521   :  { %v2524_v61 = vpop.eup %2523 }
 0x522   :  { %v730_v62 = vmul.f32 2.0, %v2524_v61 }
 0x524   :  { %v2060_v0 = vadd.f32 -1.0, %v730_v62  ;;  %97 = vperm.xlu1 %2492, %v62_v41  }
 0x58e   :  { %v844_v56 = vpop.permute.xlu1 %843 }
 0x58f   :  { %v2978_v58 = vadd.f32 %v844_v56, %v840_v55 }
 0x591   :  { %2525 = vtanh.f32 %v2978_v58 }
 0x592   :  { %2527 = vrcp.f32 %v724_v30  ;;  %v849_v12 = vpop.permute.xlu1 %848 }
 0x593   :  { %v850_v13 = vrot.slane %v849_v12, 2 }
 0x59b   :  { %v2526_v2 = vpop.eup %2525 }
 0x59c   :  { %853 = vrot.lane.b32.xlu0 %v2526_v2, %s2676_s1  ;;  %v2528_v5 = vpop.eup %2527 }
 0x59d   :  { %v733_v7 = vmul.f32 %v2528_v5, %v2060_v0  ;;  %v732_v20 = vmul.f32 %v2528_v5, %v2941_v31 }
 0x5a0   :  { %735 = vrot.lane.b32.xlu0 %v733_v7, %s2676_s1  ;;  %v63_v7 = vld [vmem:[%s3232_s0 + $0x8] sm:$0x3] }
 0x5a3   :  { %v98_v29 = vpop.permute.xlu1 %97 }
 0x5a4   :  { %v137_v38 = vmul.f32 %v2799_v34, %v98_v29  ;;  %v138_v42 = vmul.f32 %v2802_v35, %v98_v29 }
 0x5a6   :  { %v153_v43 = vadd.f32 %v137_v38, %v2805_v36  ;;  %v154_v44 = vadd.f32 %v138_v42, %v2808_v37 }
 0x5a8   :  { %v203_v47 = vcombine.low %v153_v43, %v154_v44 }
 0x5aa   :  { %2044 = vst.sshfl [vmem:[#allocation2 + $0xc] sm:$0x33 pattern:$0x76325410] %v203_v47 }
 0x5b1   :  { %v953_v54 = vld [vmem:[#allocation2 + $0xc] sm:$0xf] }
 0x60e   :  { %v854_v14 = vpop.permute.xlu0 %853 }
 0x60f   :  { %v856_v15 = vmul.f32 %v854_v14, %v850_v13 }
 0x611   :  { %2067 = vmatmul.mubr.msk.f32.vlgmr.msra.gmra.mrb[4].mxu0 %vm288_vm0, %v856_v15 }
 0x612   :  { %v736_v57 = vpop.permute.xlu0 %735  ;;  %2262 = vmatpush1.bf16.msra.mxu0 %v2829_v8  ;;  %1133 = vmatprep.mubr.f32.mxu0 %v2673_v1 }
 0x613   :  { %v2990_v21 = vadd.f32 %v736_v57, %v732_v20  ;;  %2264 = vmatprep.subr.bf16.mxu0 %v2831_v9 }
 0x615   :  { %2529 = vtanh.f32 %v2990_v21 }
 0x616   :  { %2266 = vmatpush1.bf16.msra.mxu0 %v2836_v18 }
 0x617   :  { %2268 = vmatprep.subr.bf16.mxu0 %v2839_v19 }
 0x61a   :  { %2270 = vmatpush1.bf16.msra.mxu0 %v2842_v26 }
 0x61b   :  { %2272 = vmatprep.subr.bf16.mxu0 %v2845_v28 }
 0x61e   :  { %2274 = vmatpush1.bf16.msra.mxu0 %v2848_v39 }
 0x61f   :  { %v2530_v31 = vpop.eup %2529  ;;  %2276 = vmatprep.subr.bf16.mxu0 %v2851_v40 }
 0x620   :  { %v740_v22 = vmul.f32 %v2530_v31, %v2524_v61 }
 0x622   :  { %v857_v25 = vsel %vm288_vm0, %v856_v15, %v740_v22  ;;  %2278 = vmatpush1.bf16.msra.mxu0 %v2854_v45 }
 0x623   :  { %923 = vmatmul.mubr.f32.vlgmr.msra.gmra.mrb[6].mxu1 %v857_v25  ;;  %2280 = vmatprep.subr.bf16.mxu0 %v2857_v46 }
 0x624   :  { %2294 = vmatpush1.bf16.msra.mxu1 %v2753_v10  ;;  %1232 = vmatprep.mubr.f32.mxu1 %v2673_v1 }
 0x625   :  { %2296 = vmatprep.subr.bf16.mxu1 %v2755_v11 }
 0x626   :  { %2282 = vmatpush1.bf16.msra.mxu0 %v2860_v52 }
 0x627   :  { %2284 = vmatprep.subr.bf16.mxu0 %v2863_v53 }
 0x628   :  { %2298 = vmatpush1.bf16.msra.mxu1 %v2760_v16 }
 0x629   :  { %2300 = vmatprep.subr.bf16.mxu1 %v2764_v17 }
 0x62a   :  { %2286 = vmatpush1.bf16.msra.mxu0 %v2866_v59 }
 0x62b   :  { %2288 = vmatprep.subr.bf16.mxu0 %v2869_v60 }
 0x62c   :  { %2302 = vmatpush1.bf16.msra.mxu1 %v2771_v23 }
 0x62d   :  { %2304 = vmatprep.subr.bf16.mxu1 %v2775_v24 }
 0x62e   :  { %2290 = vmatpush1.bf16.msra.mxu0 %v2872_v63 }
 0x62f   :  { %2340 = vmatprep.subr.bf16.mxu0 %v2751_v6 }
 0x630   :  { %2306 = vmatpush1.bf16.msra.mxu1 %v2779_v27 }
 0x631   :  { %2308 = vmatprep.subr.bf16.mxu1 %v2827_v3 }
 0x6e4   :  { %v1023_v49 = vpop.f32.mrb[4].mxu0 }
 0x6e5   :  { %v1025_v50 = vpop.f32.mrb[5].mxu0 }
 0x6e6   :  { %v1030_v51 = vcombine.low %v1023_v49, %v1025_v50 }
 0x6e8   :  { %v1037_v4 = vrot.slane %v1030_v51, %v2814_v48 }
 0x6ea   :  { %v1039_v55 = vadd.f32 %v1037_v4, %v953_v54 }
 0x6ec   :  { %v2068_v56 = vmul.f32 -1.442695, %v1039_v55 }
 0x6ee   :  { %2531 = vpow2.f32 %v2068_v56 }
 0x6f6   :  { %v924_v30 = vpop.f32.mrb[6].mxu1 }
 0x6f7   :  { %v926_v61 = vpop.f32.mrb[7].mxu1  ;;  %v925_v20 = vadd.f32 %v924_v30, %v2921_v33 }
 0x6f8   :  { %v2532_v62 = vpop.eup %2531  ;;  %v927_v14 = vadd.f32 %v926_v61, %v2918_v32 }
 0x6f9   :  { %v1043_v0 = vadd.f32 1.0, %v2532_v62  ;;  %v2064_v57 = vmul.f32 -1.442695, %v925_v20 }
 0x6fa   :  { %v2065_v15 = vmul.f32 -1.442695, %v927_v14 }
 0x6fb   :  { %2533 = vrcp.f32 %v1043_v0 }
 0x6fc   :  { %2535 = vpow2.f32 %v2065_v15 }
 0x6fd   :  { %2537 = vpow2.f32 %v2064_v57 }
 0x705   :  { %v2534_v2 = vpop.eup %2533 }
 0x706   :  { %1059 = vrot.lane.b32.xlu0 %v2534_v2, %s2676_s1  ;;  %v1047_v5 = vrot.slane %v2534_v2, 2  ;;  %v2536_v31 = vpop.eup %2535  ;;  %v1051_v29 = vmul.f32 %v2534_v2, %v2978_v58 }
 0x707   :  { %v936_v22 = vadd.f32 1.0, %v2536_v31  ;;  %v2538_v25 = vpop.eup %2537 }
 0x708   :  { %v1049_v41 = vmul.f32 2.0, %v1047_v5  ;;  %v935_v42 = vadd.f32 1.0, %v2538_v25 }
 0x709   :  { %2539 = vrcp.f32 %v936_v22 }
 0x70a   :  { %102 = vperm.xlu0 %2491, %v63_v7   ;;  %v2069_v12 = vadd.f32 -1.0, %v1049_v41 }
 0x70c   :  { %v1052_v13 = vmul.f32 %v2534_v2, %v2069_v12 }
 0x70e   :  { %1054 = vrot.lane.b32.xlu1 %v1052_v13, %s2676_s1 }
 0x713   :  { %v2540_v44 = vpop.eup %2539 }
 0x714   :  { %v941_v49 = vmul.f32 2.0, %v2540_v44 }
 0x716   :  { %v2066_v58 = vadd.f32 -1.0, %v941_v49 }
 0x778   :  { %v1060_v47 = vpop.permute.xlu0 %1059 }
 0x779   :  { %v1061_v0 = vrot.slane %v1060_v47, 2 }
 0x780   :  { %v1055_v38 = vpop.permute.xlu1 %1054 }
 0x781   :  { %v3031_v43 = vadd.f32 %v1055_v38, %v1051_v29 }
 0x783   :  { %2541 = vtanh.f32 %v3031_v43 }
 0x784   :  { %2543 = vrcp.f32 %v935_v42 }
 0x789   :  { %v103_v50 = vpop.permute.xlu0 %102 }
 0x78a   :  { %v139_v51 = vmul.f32 %v2799_v34, %v103_v50  ;;  %v140_v54 = vmul.f32 %v2802_v35, %v103_v50 }
 0x78c   :  { %v155_v4 = vadd.f32 %v139_v51, %v2805_v36  ;;  %v156_v55 = vadd.f32 %v140_v54, %v2808_v37 }
 0x78d   :  { %v2542_v56 = vpop.eup %2541 }
 0x78e   :  { %v211_v30 = vcombine.low %v155_v4, %v156_v55  ;;  %1064 = vrot.lane.b32.xlu1 %v2542_v56, %s2676_s1  ;;  %v2544_v61 = vpop.eup %2543 }
 0x78f   :  { %v944_v62 = vmul.f32 %v2544_v61, %v2066_v58  ;;  %v943_v7 = vmul.f32 %v2544_v61, %v2990_v21 }
 0x790   :  { %2045 = vst.sshfl [vmem:[#allocation2 + $0x10] sm:$0x33 pattern:$0x76325410] %v211_v30 }
 0x792   :  { %946 = vrot.lane.b32.xlu1 %v944_v62, %s2676_s1 }
 0x797   :  { %v1164_v22 = vld [vmem:[#allocation2 + $0x10] sm:$0xf] }
 0x800   :  { %v1065_v2 = vpop.permute.xlu1 %1064 }
 0x801   :  { %v1067_v5 = vmul.f32 %v1065_v2, %v1061_v0 }
 0x803   :  { %2073 = vmatmul.mubr.msk.f32.vlgmr.msra.gmra.mrb[8].mxu1 %vm288_vm0, %v1067_v5 }
 0x804   :  { %v947_v41 = vpop.permute.xlu1 %946  ;;  %2310 = vmatpush1.bf16.msra.mxu1 %v2829_v8  ;;  %1344 = vmatprep.mubr.f32.mxu1 %v2673_v1 }
 0x805   :  { %v3044_v12 = vadd.f32 %v947_v41, %v943_v7  ;;  %2312 = vmatprep.subr.bf16.mxu1 %v2831_v9 }
 0x807   :  { %2545 = vtanh.f32 %v3044_v12 }
 0x808   :  { %2314 = vmatpush1.bf16.msra.mxu1 %v2836_v18 }
 0x809   :  { %2316 = vmatprep.subr.bf16.mxu1 %v2839_v19 }
 0x80c   :  { %2318 = vmatpush1.bf16.msra.mxu1 %v2842_v26 }
 0x80d   :  { %2320 = vmatprep.subr.bf16.mxu1 %v2845_v28 }
 0x810   :  { %2322 = vmatpush1.bf16.msra.mxu1 %v2848_v39 }
 0x811   :  { %v2546_v21 = vpop.eup %2545  ;;  %2324 = vmatprep.subr.bf16.mxu1 %v2851_v40 }
 0x812   :  { %v951_v13 = vmul.f32 %v2546_v21, %v2540_v44 }
 0x814   :  { %v1068_v14 = vsel %vm288_vm0, %v1067_v5, %v951_v13  ;;  %2326 = vmatpush1.bf16.msra.mxu1 %v2854_v45 }
 0x815   :  { %1134 = vmatmul.mubr.f32.vlgmr.msra.gmra.mrb[6].mxu0 %v1068_v14  ;;  %2328 = vmatprep.subr.bf16.mxu1 %v2857_v46 }
 0x816   :  { %2342 = vmatpush1.bf16.msra.mxu0 %v2753_v10  ;;  %1443 = vmatprep.mubr.f32.mxu0 %v2673_v1 }
 0x817   :  { %2344 = vmatprep.subr.bf16.mxu0 %v2755_v11 }
 0x818   :  { %2330 = vmatpush1.bf16.msra.mxu1 %v2860_v52 }
 0x819   :  { %2332 = vmatprep.subr.bf16.mxu1 %v2863_v53 }
 0x81a   :  { %2346 = vmatpush1.bf16.msra.mxu0 %v2760_v16 }
 0x81b   :  { %2348 = vmatprep.subr.bf16.mxu0 %v2764_v17 }
 0x81c   :  { %2334 = vmatpush1.bf16.msra.mxu1 %v2866_v59 }
 0x81d   :  { %2336 = vmatprep.subr.bf16.mxu1 %v2869_v60 }
 0x81e   :  { %2350 = vmatpush1.bf16.msra.mxu0 %v2771_v23 }
 0x81f   :  { %2352 = vmatprep.subr.bf16.mxu0 %v2775_v24 }
 0x820   :  { %2338 = vmatpush1.bf16.msra.mxu1 %v2872_v63 }
 0x821   :  { %2388 = vmatprep.subr.bf16.mxu1 %v2751_v6 }
 0x822   :  { %2354 = vmatpush1.bf16.msra.mxu0 %v2779_v27 }
 0x823   :  { %2356 = vmatprep.subr.bf16.mxu0 %v2827_v3 }
 0x8d6   :  { %v1234_v15 = vpop.f32.mrb[8].mxu1 }
 0x8d7   :  { %v1236_v20 = vpop.f32.mrb[9].mxu1 }
 0x8d8   :  { %v1241_v57 = vcombine.low %v1234_v15, %v1236_v20 }
 0x8da   :  { %v1248_v31 = vrot.slane %v1241_v57, %v2814_v48 }
 0x8dc   :  { %v1250_v25 = vadd.f32 %v1248_v31, %v1164_v22  ;;  %v64_v31 = vld [vmem:[%s3232_s0 + $0xa] sm:$0x3] }
 0x8de   :  { %v2074_v29 = vmul.f32 -1.442695, %v1250_v25 }
 0x8e0   :  { %2547 = vpow2.f32 %v2074_v29 }
 0x8e8   :  { %v1135_v38 = vpop.f32.mrb[6].mxu0 }
 0x8e9   :  { %v1136_v42 = vadd.f32 %v1135_v38, %v2921_v33  ;;  %v1137_v44 = vpop.f32.mrb[7].mxu0 }
 0x8ea   :  { %v2548_v47 = vpop.eup %2547  ;;  %v1138_v49 = vadd.f32 %v1137_v44, %v2918_v32 }
 0x8eb   :  { %v1254_v50 = vadd.f32 1.0, %v2548_v47  ;;  %v2070_v51 = vmul.f32 -1.442695, %v1136_v42 }
 0x8ec   :  { %v2071_v54 = vmul.f32 -1.442695, %v1138_v49 }
 0x8ed   :  { %2549 = vrcp.f32 %v1254_v50 }
 0x8ee   :  { %2551 = vpow2.f32 %v2070_v51 }
 0x8ef   :  { %2553 = vpow2.f32 %v2071_v54 }
 0x8f7   :  { %v2550_v4 = vpop.eup %2549 }
 0x8f8   :  { %v2552_v55 = vpop.eup %2551  ;;  %1270 = vrot.lane.b32.xlu1 %v2550_v4, %s2676_s1  ;;  %v1258_v58 = vrot.slane %v2550_v4, 2  ;;  %v1262_v14 = vmul.f32 %v2550_v4, %v3031_v43 }
 0x8f9   :  { %v2554_v56 = vpop.eup %2553  ;;  %v1146_v62 = vadd.f32 1.0, %v2552_v55 }
 0x8fa   :  { %v1147_v30 = vadd.f32 1.0, %v2554_v56  ;;  %v1260_v61 = vmul.f32 2.0, %v1258_v58 }
 0x8fc   :  { %2555 = vrcp.f32 %v1147_v30  ;;  %v2075_v0 = vadd.f32 -1.0, %v1260_v61 }
 0x8fd   :  { %2557 = vrcp.f32 %v1146_v62 }
 0x8fe   :  { %v1263_v2 = vmul.f32 %v2550_v4, %v2075_v0 }
 0x900   :  { %1265 = vrot.lane.b32.xlu0 %v1263_v2, %s2676_s1 }
 0x906   :  { %v2556_v5 = vpop.eup %2555 }
 0x907   :  { %v1152_v7 = vmul.f32 2.0, %v2556_v5  ;;  %v2558_v21 = vpop.eup %2557 }
 0x908   :  { %v1154_v29 = vmul.f32 %v2558_v21, %v3044_v12 }
 0x909   :  { %v2072_v41 = vadd.f32 -1.0, %v1152_v7 }
 0x90b   :  { %v1155_v13 = vmul.f32 %v2558_v21, %v2072_v41 }
 0x90d   :  { %1157 = vrot.lane.b32.xlu1 %v1155_v13, %s2676_s1 }
 0x96a   :  { %v1271_v22 = vpop.permute.xlu1 %1270 }
 0x96b   :  { %v1272_v42 = vrot.slane %v1271_v22, 2 }
 0x972   :  { %v1266_v15 = vpop.permute.xlu0 %1265 }
 0x973   :  { %v3079_v20 = vadd.f32 %v1266_v15, %v1262_v14 }
 0x975   :  { %2559 = vtanh.f32 %v3079_v20 }
 0x97f   :  { %v2560_v57 = vpop.eup %2559  ;;  %v1158_v25 = vpop.permute.xlu1 %1157 }
 0x980   :  { %1275 = vrot.lane.b32.xlu0 %v2560_v57, %s2676_s1  ;;  %v3087_v38 = vadd.f32 %v1158_v25, %v1154_v29 }
 0x982   :  { %2561 = vtanh.f32 %v3087_v38 }
 0x984   :  { %107 = vperm.xlu0 %2491, %v64_v31  }
 0x98c   :  { %v2562_v43 = vpop.eup %2561 }
 0x98d   :  { %v1162_v49 = vmul.f32 %v2562_v43, %v2556_v5 }
 0x9f2   :  { %v1276_v44 = vpop.permute.xlu0 %1275 }
 0x9f3   :  { %v1278_v47 = vmul.f32 %v1276_v44, %v1272_v42 }
 0x9f5   :  { %2079 = vmatmul.mubr.msk.f32.vlgmr.msra.gmra.mrb[8].mxu0 %vm288_vm0, %v1278_v47  ;;  %v1279_v50 = vsel %vm288_vm0, %v1278_v47, %v1162_v49 }
 0x9f6   :  { %1345 = vmatmul.mubr.f32.vlgmr.msra.gmra.mrb[10].mxu1 %v1279_v50  ;;  %2358 = vmatpush1.bf16.msra.mxu0 %v2829_v8 }
 0x9f7   :  { %2360 = vmatprep.subr.bf16.mxu0 %v2831_v9  ;;  %2390 = vmatpush1.bf16.msra.mxu1 %v2753_v10 }
 0x9f8   :  { %2392 = vmatprep.subr.bf16.mxu1 %v2755_v11  ;;  %1654 = vmatprep.mubr.f32.mxu1 %v2673_v1 }
 0x9f9   :  { %1555 = vmatprep.mubr.f32.mxu0 %v2673_v1 }
 0x9fa   :  { %2362 = vmatpush1.bf16.msra.mxu0 %v2836_v18 }
 0x9fb   :  { %2364 = vmatprep.subr.bf16.mxu0 %v2839_v19  ;;  %2394 = vmatpush1.bf16.msra.mxu1 %v2760_v16 }
 0x9fc   :  { %2396 = vmatprep.subr.bf16.mxu1 %v2764_v17 }
 0x9fe   :  { %2366 = vmatpush1.bf16.msra.mxu0 %v2842_v26 }
 0x9ff   :  { %2368 = vmatprep.subr.bf16.mxu0 %v2845_v28  ;;  %2398 = vmatpush1.bf16.msra.mxu1 %v2771_v23 }
 0xa00   :  { %2400 = vmatprep.subr.bf16.mxu1 %v2775_v24 }
 0xa02   :  { %2370 = vmatpush1.bf16.msra.mxu0 %v2848_v39 }
 0xa03   :  { %v108_v12 = vpop.permute.xlu0 %107  ;;  %2372 = vmatprep.subr.bf16.mxu0 %v2851_v40  ;;  %2402 = vmatpush1.bf16.msra.mxu1 %v2779_v27 }
 0xa04   :  { %v141_v51 = vmul.f32 %v2799_v34, %v108_v12  ;;  %v142_v54 = vmul.f32 %v2802_v35, %v108_v12  ;;  %2404 = vmatprep.subr.bf16.mxu1 %v2827_v3 }
 0xa06   :  { %v157_v4 = vadd.f32 %v141_v51, %v2805_v36  ;;  %v158_v55 = vadd.f32 %v142_v54, %v2808_v37  ;;  %2374 = vmatpush1.bf16.msra.mxu0 %v2854_v45 }
 0xa07   :  { %2376 = vmatprep.subr.bf16.mxu0 %v2857_v46 }
 0xa08   :  { %v219_v58 = vcombine.low %v157_v4, %v158_v55 }
 0xa0a   :  { %2046 = vst.sshfl [vmem:[#allocation2 + $0x14] sm:$0x33 pattern:$0x76325410] %v219_v58  ;;  %2378 = vmatpush1.bf16.msra.mxu0 %v2860_v52 }
 0xa0b   :  { %2380 = vmatprep.subr.bf16.mxu0 %v2863_v53 }
 0xa0e   :  { %2382 = vmatpush1.bf16.msra.mxu0 %v2866_v59 }
 0xa0f   :  { %2384 = vmatprep.subr.bf16.mxu0 %v2869_v60 }
 0xa11   :  { %v1375_v21 = vld [vmem:[#allocation2 + $0x14] sm:$0xf] }
 0xa12   :  { %2386 = vmatpush1.bf16.msra.mxu0 %v2872_v63 }
 0xa13   :  { %2436 = vmatprep.subr.bf16.mxu0 %v2751_v6 }
 0xac8   :  { %v1445_v56 = vpop.f32.mrb[8].mxu0 }
 0xac9   :  { %v1346_v30 = vpop.f32.mrb[10].mxu1  ;;  %v1447_v61 = vpop.f32.mrb[9].mxu0 }
 0xaca   :  { %v1347_v62 = vadd.f32 %v1346_v30, %v2921_v33  ;;  %v1452_v0 = vcombine.low %v1445_v56, %v1447_v61  ;;  %v1348_v2 = vpop.f32.mrb[11].mxu1  ;;  %v65_v61 = vld [vmem:[%s3232_s0 + $0xc] sm:$0x3] }
 0xacb   :  { %v1349_v5 = vadd.f32 %v1348_v2, %v2918_v32 }
 0xacc   :  { %v2076_v7 = vmul.f32 -1.442695, %v1347_v62  ;;  %v1459_v41 = vrot.slane %v1452_v0, %v2814_v48 }
 0xacd   :  { %v2077_v13 = vmul.f32 -1.442695, %v1349_v5 }
 0xace   :  { %2563 = vpow2.f32 %v2076_v7  ;;  %v1461_v14 = vadd.f32 %v1459_v41, %v1375_v21 }
 0xacf   :  { %2565 = vpow2.f32 %v2077_v13 }
 0xad0   :  { %v2080_v15 = vmul.f32 -1.442695, %v1461_v14 }
 0xad2   :  { %2567 = vpow2.f32 %v2080_v15 }
 0xad8   :  { %v2564_v6 = vpop.eup %2563 }
 0xad9   :  { %v2566_v57 = vpop.eup %2565  ;;  %v1357_v25 = vadd.f32 1.0, %v2564_v6 }
 0xada   :  { %v1358_v31 = vadd.f32 1.0, %v2566_v57 }
 0xadc   :  { %v2568_v22 = vpop.eup %2567  ;;  %2569 = vrcp.f32 %v1358_v31 }
 0xadd   :  { %v1465_v29 = vadd.f32 1.0, %v2568_v22 }
 0xadf   :  { %2571 = vrcp.f32 %v1465_v29 }
 0xae0   :  { %2573 = vrcp.f32 %v1357_v25 }
 0xae6   :  { %v2570_v43 = vpop.eup %2569 }
 0xae7   :  { %v1363_v42 = vmul.f32 2.0, %v2570_v43 }
 0xae9   :  { %v2572_v44 = vpop.eup %2571  ;;  %v2078_v47 = vadd.f32 -1.0, %v1363_v42 }
 0xaea   :  { %v2574_v49 = vpop.eup %2573  ;;  %1481 = vrot.lane.b32.xlu0 %v2572_v44, %s2676_s1  ;;  %v1469_v50 = vrot.slane %v2572_v44, 2  ;;  %v1473_v55 = vmul.f32 %v2572_v44, %v3079_v20 }
 0xaeb   :  { %v1366_v12 = vmul.f32 %v2574_v49, %v2078_v47  ;;  %v1365_v2 = vmul.f32 %v2574_v49, %v3087_v38 }
 0xaec   :  { %v1471_v51 = vmul.f32 2.0, %v1469_v50 }
 0xaee   :  { %1368 = vrot.lane.b32.xlu0 %v1366_v12, %s2676_s1  ;;  %v2081_v54 = vadd.f32 -1.0, %v1471_v51 }
 0xaf0   :  { %v1474_v4 = vmul.f32 %v2572_v44, %v2081_v54 }
 0xaf2   :  { %1476 = vrot.lane.b32.xlu1 %v1474_v4, %s2676_s1 }
 0xb5c   :  { %v1482_v62 = vpop.permute.xlu0 %1481 }
 0xb5d   :  { %v1483_v7 = vrot.slane %v1482_v62, 2 }
 0xb60   :  { %v1369_v0 = vpop.permute.xlu0 %1368 }
 0xb61   :  { %v3137_v5 = vadd.f32 %v1369_v0, %v1365_v2 }
 0xb64   :  { %v1477_v58 = vpop.permute.xlu1 %1476 }
 0xb65   :  { %v3129_v56 = vadd.f32 %v1477_v58, %v1473_v55 }
 0xb67   :  { %2575 = vtanh.f32 %v3129_v56 }
 0xb68   :  { %2577 = vtanh.f32 %v3137_v5 }
 0xb71   :  { %v2576_v30 = vpop.eup %2575 }
 0xb72   :  { %1486 = vrot.lane.b32.xlu1 %v2576_v30, %s2676_s1  ;;  %v2578_v20 = vpop.eup %2577 }
 0xb73   :  { %v1373_v13 = vmul.f32 %v2578_v20, %v2570_v43 }
 0xb76   :  { %112 = vperm.xlu1 %2492, %v65_v61  }
 0xbe4   :  { %v1487_v41 = vpop.permute.xlu1 %1486 }
 0xbe5   :  { %v1489_v21 = vmul.f32 %v1487_v41, %v1483_v7 }
 0xbe7   :  { %2085 = vmatmul.mubr.msk.f32.vlgmr.msra.gmra.mrb[12].mxu1 %vm288_vm0, %v1489_v21  ;;  %v1490_v14 = vsel %vm288_vm0, %v1489_v21, %v1373_v13 }
 0xbe8   :  { %1556 = vmatmul.mubr.f32.vlgmr.msra.gmra.mrb[10].mxu0 %v1490_v14  ;;  %2406 = vmatpush1.bf16.msra.mxu1 %v2829_v8 }
 0xbe9   :  { %2408 = vmatprep.subr.bf16.mxu1 %v2831_v9  ;;  %2438 = vmatpush1.bf16.msra.mxu0 %v2753_v10 }
 0xbea   :  { %2440 = vmatprep.subr.bf16.mxu0 %v2755_v11  ;;  %1865 = vmatprep.mubr.f32.mxu0 %v2673_v1 }
 0xbeb   :  { %1766 = vmatprep.mubr.f32.mxu1 %v2673_v1 }
 0xbec   :  { %2410 = vmatpush1.bf16.msra.mxu1 %v2836_v18 }
 0xbed   :  { %2412 = vmatprep.subr.bf16.mxu1 %v2839_v19  ;;  %2442 = vmatpush1.bf16.msra.mxu0 %v2760_v16 }
 0xbee   :  { %2444 = vmatprep.subr.bf16.mxu0 %v2764_v17 }
 0xbf0   :  { %2414 = vmatpush1.bf16.msra.mxu1 %v2842_v26 }
 0xbf1   :  { %2416 = vmatprep.subr.bf16.mxu1 %v2845_v28  ;;  %2446 = vmatpush1.bf16.msra.mxu0 %v2771_v23 }
 0xbf2   :  { %2448 = vmatprep.subr.bf16.mxu0 %v2775_v24 }
 0xbf4   :  { %2418 = vmatpush1.bf16.msra.mxu1 %v2848_v39 }
 0xbf5   :  { %v113_v10 = vpop.permute.xlu1 %112  ;;  %2420 = vmatprep.subr.bf16.mxu1 %v2851_v40  ;;  %2450 = vmatpush1.bf16.msra.mxu0 %v2779_v27 }
 0xbf6   :  { %v143_v11 = vmul.f32 %v2799_v34, %v113_v10  ;;  %v144_v16 = vmul.f32 %v2802_v35, %v113_v10  ;;  %2452 = vmatprep.subr.bf16.mxu0 %v2827_v3  ;;  %v66_v10 = vld [vmem:[%s3232_s0 + $0xe] sm:$0x3] }
 0xbf8   :  { %v159_v17 = vadd.f32 %v143_v11, %v2805_v36  ;;  %v160_v38 = vadd.f32 %v144_v16, %v2808_v37  ;;  %2422 = vmatpush1.bf16.msra.mxu1 %v2854_v45 }
 0xbf9   :  { %2424 = vmatprep.subr.bf16.mxu1 %v2857_v46 }
 0xbfa   :  { %v227_v23 = vcombine.low %v159_v17, %v160_v38 }
 0xbfc   :  { %2047 = vst.sshfl [vmem:[#allocation2 + $0x18] sm:$0x33 pattern:$0x76325410] %v227_v23  ;;  %2426 = vmatpush1.bf16.msra.mxu1 %v2860_v52 }
 0xbfd   :  { %2428 = vmatprep.subr.bf16.mxu1 %v2863_v53 }
 0xc00   :  { %2430 = vmatpush1.bf16.msra.mxu1 %v2866_v59 }
 0xc01   :  { %2432 = vmatprep.subr.bf16.mxu1 %v2869_v60 }
 0xc03   :  { %v1586_v29 = vld [vmem:[#allocation2 + $0x18] sm:$0xf] }
 0xc04   :  { %2434 = vmatpush1.bf16.msra.mxu1 %v2872_v63 }
 0xcba   :  { %v1656_v24 = vpop.f32.mrb[12].mxu1 }
 0xcbb   :  { %v1557_v27 = vpop.f32.mrb[10].mxu0  ;;  %v1658_v3 = vpop.f32.mrb[13].mxu1 }
 0xcbc   :  { %v1558_v15 = vadd.f32 %v1557_v27, %v2921_v33  ;;  %v1663_v6 = vcombine.low %v1656_v24, %v1658_v3  ;;  %v1559_v57 = vpop.f32.mrb[11].mxu0 }
 0xcbd   :  { %v1560_v31 = vadd.f32 %v1559_v57, %v2918_v32 }
 0xcbe   :  { %v2082_v22 = vmul.f32 -1.442695, %v1558_v15  ;;  %v1670_v25 = vrot.slane %v1663_v6, %v2814_v48 }
 0xcbf   :  { %v2083_v43 = vmul.f32 -1.442695, %v1560_v31 }
 0xcc0   :  { %2579 = vpow2.f32 %v2082_v22  ;;  %v1672_v42 = vadd.f32 %v1670_v25, %v1586_v29 }
 0xcc1   :  { %2581 = vpow2.f32 %v2083_v43 }
 0xcc2   :  { %v2086_v44 = vmul.f32 -1.442695, %v1672_v42 }
 0xcc4   :  { %2583 = vpow2.f32 %v2086_v44 }
 0xcca   :  { %v2580_v47 = vpop.eup %2579 }
 0xccb   :  { %v2582_v49 = vpop.eup %2581  ;;  %v1568_v51 = vadd.f32 1.0, %v2580_v47 }
 0xccc   :  { %v1569_v50 = vadd.f32 1.0, %v2582_v49 }
 0xcce   :  { %v2584_v12 = vpop.eup %2583  ;;  %2585 = vrcp.f32 %v1569_v50 }
 0xccf   :  { %v1676_v54 = vadd.f32 1.0, %v2584_v12 }
 0xcd1   :  { %2587 = vrcp.f32 %v1676_v54 }
 0xcd2   :  { %2589 = vrcp.f32 %v1568_v51 }
 0xcd8   :  { %v2586_v4 = vpop.eup %2585 }
 0xcd9   :  { %v1574_v55 = vmul.f32 2.0, %v2586_v4 }
 0xcdb   :  { %v2588_v58 = vpop.eup %2587  ;;  %v2084_v30 = vadd.f32 -1.0, %v1574_v55 }
 0xcdc   :  { %v2590_v61 = vpop.eup %2589  ;;  %1692 = vrot.lane.b32.xlu1 %v2588_v58, %s2676_s1  ;;  %v1680_v62 = vrot.slane %v2588_v58, 2  ;;  %v1684_v41 = vmul.f32 %v2588_v58, %v3129_v56 }
 0xcdd   :  { %v1577_v0 = vmul.f32 %v2590_v61, %v2084_v30  ;;  %v1576_v17 = vmul.f32 %v2590_v61, %v3137_v5 }
 0xcde   :  { %v1682_v2 = vmul.f32 2.0, %v1680_v62 }
 0xce0   :  { %1579 = vrot.lane.b32.xlu1 %v1577_v0, %s2676_s1  ;;  %v2087_v20 = vadd.f32 -1.0, %v1682_v2 }
 0xce2   :  { %v1685_v7 = vmul.f32 %v2588_v58, %v2087_v20 }
 0xce4   :  { %1687 = vrot.lane.b32.xlu0 %v1685_v7, %s2676_s1 }
 0xd4e   :  { %v1693_v11 = vpop.permute.xlu1 %1692 }
 0xd4f   :  { %v1694_v23 = vrot.slane %v1693_v11, 2 }
 0xd52   :  { %v1580_v16 = vpop.permute.xlu1 %1579 }
 0xd53   :  { %v3186_v38 = vadd.f32 %v1580_v16, %v1576_v17 }
 0xd56   :  { %v1688_v21 = vpop.permute.xlu0 %1687 }
 0xd57   :  { %v3178_v13 = vadd.f32 %v1688_v21, %v1684_v41 }
 0xd59   :  { %2591 = vtanh.f32 %v3178_v13 }
 0xd5a   :  { %2593 = vtanh.f32 %v3186_v38 }
 0xd63   :  { %v2592_v14 = vpop.eup %2591 }
 0xd64   :  { %1697 = vrot.lane.b32.xlu0 %v2592_v14, %s2676_s1  ;;  %v2594_v56 = vpop.eup %2593 }
 0xd65   :  { %v1584_v3 = vmul.f32 %v2594_v56, %v2586_v4 }
 0xd68   :  { %117 = vperm.xlu0 %2491, %v66_v10  }
 0xdd6   :  { %v1698_v24 = vpop.permute.xlu0 %1697 }
 0xdd7   :  { %v1700_v27 = vmul.f32 %v1698_v24, %v1694_v23 }
 0xdd9   :  { %2091 = vmatmul.mubr.msk.f32.vlgmr.msra.gmra.mrb[12].mxu0 %vm288_vm0, %v1700_v27  ;;  %v1701_v15 = vsel %vm288_vm0, %v1700_v27, %v1584_v3 }
 0xdda   :  { %1767 = vmatmul.mubr.f32.vlgmr.msra.gmra.mrb[14].mxu1 %v1701_v15  ;;  %2454 = vmatpush1.bf16.msra.mxu0 %v2829_v8 }
 0xddb   :  { %2456 = vmatprep.subr.bf16.mxu0 %v2831_v9  ;;  %1977 = vmatprep.mubr.f32.mxu0 %v2673_v1 }
 0xdde   :  { %2458 = vmatpush1.bf16.msra.mxu0 %v2836_v18 }
 0xddf   :  { %2460 = vmatprep.subr.bf16.mxu0 %v2839_v19 }
 0xde2   :  { %2462 = vmatpush1.bf16.msra.mxu0 %v2842_v26 }
 0xde3   :  { %2464 = vmatprep.subr.bf16.mxu0 %v2845_v28 }
 0xde6   :  { %2466 = vmatpush1.bf16.msra.mxu0 %v2848_v39 }
 0xde7   :  { %v118_v5 = vpop.permute.xlu0 %117  ;;  %2468 = vmatprep.subr.bf16.mxu0 %v2851_v40 }
 0xde8   :  { %v145_v6 = vmul.f32 %v2799_v34, %v118_v5  ;;  %v146_v8 = vmul.f32 %v2802_v35, %v118_v5 }
 0xdea   :  { %v161_v9 = vadd.f32 %v145_v6, %v2805_v36  ;;  %v162_v1 = vadd.f32 %v146_v8, %v2808_v37  ;;  %2470 = vmatpush1.bf16.msra.mxu0 %v2854_v45 }
 0xdeb   :  { %2472 = vmatprep.subr.bf16.mxu0 %v2857_v46 }
 0xdec   :  { %v235_v18 = vcombine.low %v161_v9, %v162_v1 }
 0xdee   :  { %2048 = vst.sshfl [vmem:[#allocation2 + $0x1c] sm:$0x33 pattern:$0x76325410] %v235_v18  ;;  %2474 = vmatpush1.bf16.msra.mxu0 %v2860_v52 }
 0xdef   :  { %2476 = vmatprep.subr.bf16.mxu0 %v2863_v53 }
 0xdf2   :  { %2478 = vmatpush1.bf16.msra.mxu0 %v2866_v59 }
 0xdf3   :  { %2480 = vmatprep.subr.bf16.mxu0 %v2869_v60 }
 0xdf5   :  { %v1797_v45 = vld [vmem:[#allocation2 + $0x1c] sm:$0xf] }
 0xdf6   :  { %2482 = vmatpush1.bf16.msra.mxu0 %v2872_v63 }
 0xeac   :  { %v1867_v34 = vpop.f32.mrb[12].mxu0 }
 0xead   :  { %v1768_v35 = vpop.f32.mrb[14].mxu1  ;;  %v1869_v36 = vpop.f32.mrb[13].mxu0 }
 0xeae   :  { %v1769_v37 = vadd.f32 %v1768_v35, %v2921_v33  ;;  %v1874_v19 = vcombine.low %v1867_v34, %v1869_v36  ;;  %v1770_v26 = vpop.f32.mrb[15].mxu1 }
 0xeaf   :  { %v1771_v28 = vadd.f32 %v1770_v26, %v2918_v32 }
 0xeb0   :  { %v2088_v39 = vmul.f32 -1.442695, %v1769_v37  ;;  %v1881_v40 = vrot.slane %v1874_v19, %v2814_v48  ;;  %v2098_v19 = vld [vmem:[#allocation3] ss:$0 sm:$0xff] }
 0xeb1   :  { %v2089_v46 = vmul.f32 -1.442695, %v1771_v28 }
 0xeb2   :  { %2595 = vpow2.f32 %v2088_v39  ;;  %v1883_v52 = vadd.f32 %v1881_v40, %v1797_v45 }
 0xeb3   :  { %2597 = vpow2.f32 %v2089_v46 }
 0xeb4   :  { %v2092_v53 = vmul.f32 -1.442695, %v1883_v52 }
 0xeb6   :  { %2599 = vpow2.f32 %v2092_v53 }
 0xebc   :  { %v2596_v59 = vpop.eup %2595 }
 0xebd   :  { %v2598_v60 = vpop.eup %2597  ;;  %v1779_v31 = vadd.f32 1.0, %v2596_v59 }
 0xebe   :  { %v1780_v63 = vadd.f32 1.0, %v2598_v60 }
 0xec0   :  { %v2600_v57 = vpop.eup %2599  ;;  %2601 = vrcp.f32 %v1780_v63 }
 0xec1   :  { %v1887_v22 = vadd.f32 1.0, %v2600_v57 }
 0xec3   :  { %2603 = vrcp.f32 %v1887_v22 }
 0xec4   :  { %2605 = vrcp.f32 %v1779_v31 }
 0xeca   :  { %v2602_v25 = vpop.eup %2601 }
 0xecb   :  { %v1785_v29 = vmul.f32 2.0, %v2602_v25 }
 0xecd   :  { %v2604_v43 = vpop.eup %2603  ;;  %v2090_v48 = vadd.f32 -1.0, %v1785_v29 }
 0xece   :  { %v2606_v42 = vpop.eup %2605  ;;  %v1891_v44 = vrot.slane %v2604_v43, 2  ;;  %v1895_v51 = vmul.f32 %v2604_v43, %v3178_v13  ;;  %v2097_v13 = vld [vmem:[%s3238_s6] ss:$0 sm:$0xff] }
 0xecf   :  { %v1788_v47 = vmul.f32 %v2606_v42, %v2090_v48  ;;  %v1787_v30 = vmul.f32 %v2606_v42, %v3186_v38 }
 0xed0   :  { %v1893_v49 = vmul.f32 2.0, %v1891_v44 }
 0xed1   :  { %1790 = vrot.lane.b32.xlu0 %v1788_v47, %s2676_s1 }
 0xed2   :  { %v2093_v50 = vadd.f32 -1.0, %v1893_v49 }
 0xed4   :  { %v1896_v12 = vmul.f32 %v2604_v43, %v2093_v50 }
 0xed6   :  { %1898 = vrot.lane.b32.xlu1 %v1896_v12, %s2676_s1 }
 0xeda   :  { %1903 = vrot.lane.b32.xlu1 %v2604_v43, %s2676_s1 }
 0xf43   :  { %v1791_v58 = vpop.permute.xlu0 %1790 }
 0xf44   :  { %v1793_v61 = vadd.f32 %v1791_v58, %v1787_v30 }
 0xf48   :  { %v1899_v54 = vpop.permute.xlu1 %1898 }
 0xf49   :  { %v1901_v4 = vadd.f32 %v1899_v54, %v1895_v51 }
 0xf4b   :  { %2607 = vtanh.f32 %v1901_v4 }
 0xf4c   :  { %2609 = vtanh.f32 %v1793_v61  ;;  %v1904_v62 = vpop.permute.xlu1 %1903 }
 0xf4d   :  { %v1905_v2 = vrot.slane %v1904_v62, 2 }
 0xf55   :  { %v2608_v55 = vpop.eup %2607 }
 0xf56   :  { %1908 = vrot.lane.b32.xlu0 %v2608_v55, %s2676_s1  ;;  %v2610_v0 = vpop.eup %2609 }
 0xf57   :  { %v1795_v41 = vmul.f32 %v2610_v0, %v2602_v25 }
 0xf5a   :  { %2013 = vrot.lane.b32.xlu0 %v2097_v13, %s2676_s1 }
 0xfc8   :  { %v1909_v20 = vpop.permute.xlu0 %1908 }
 0xfc9   :  { %v1911_v7 = vmul.f32 %v1909_v20, %v1905_v2 }
 0xfcb   :  { %v1912_v21 = vsel %vm288_vm0, %v1911_v7, %v1795_v41 }
 0xfcc   :  { %1978 = vmatmul.mubr.f32.vlgmr.msra.gmra.mrb[14].mxu0 %v1912_v21  ;;  %v2014_v18 = vpop.permute.xlu0 %2013 }
0x109f   :  { %v1979_v14 = vpop.f32.mrb[14].mxu0 }
0x10a0   :  { %v1980_v10 = vadd.f32 %v1979_v14, %v2921_v33  ;;  %v1981_v11 = vpop.f32.mrb[15].mxu0 }
0x10a1   :  { %v1982_v16 = vadd.f32 %v1981_v11, %v2918_v32 }
0x10a2   :  { %v2094_v17 = vmul.f32 -1.442695, %v1980_v10 }
0x10a3   :  { %v2095_v38 = vmul.f32 -1.442695, %v1982_v16 }
0x10a4   :  { %2611 = vpow2.f32 %v2094_v17 }
0x10a5   :  { %2613 = vpow2.f32 %v2095_v38 }
0x10ae   :  { %v2612_v56 = vpop.eup %2611 }
0x10af   :  { %v2614_v23 = vpop.eup %2613  ;;  %v1990_v27 = vadd.f32 1.0, %v2612_v56 }
0x10b0   :  { %v1991_v24 = vadd.f32 1.0, %v2614_v23 }
0x10b2   :  { %2615 = vrcp.f32 %v1991_v24 }
0x10b3   :  { %2617 = vrcp.f32 %v1990_v27 }
0x10bc   :  { %v2616_v3 = vpop.eup %2615 }
0x10bd   :  { %v1996_v15 = vmul.f32 2.0, %v2616_v3  ;;  %v2618_v6 = vpop.eup %2617 }
0x10be   :  { %v1998_v33 = vmul.f32 %v2618_v6, %v1793_v61 }
0x10bf   :  { %v2096_v5 = vadd.f32 -1.0, %v1996_v15 }
0x10c1   :  { %v1999_v8 = vmul.f32 %v2618_v6, %v2096_v5 }
0x10c3   :  { %2001 = vrot.lane.b32.xlu1 %v1999_v8, %s2676_s1 }
0x1135   :  { %v2002_v9 = vpop.permute.xlu1 %2001 }
0x1136   :  { %v2004_v32 = vadd.f32 %v2002_v9, %v1998_v33 }
0x1138   :  { %2619 = vtanh.f32 %v2004_v32 }
0x1142   :  { %v2620_v1 = vpop.eup %2619 }
0x1143   :  { %v2006_v34 = vmul.f32 %v2620_v1, %v2616_v3 }
0x1145   :  { %v2016_v35 = vmul.f32 %v2014_v18, %v2006_v34 }
0x1147   :  { %2018 = vrot.lane.b32.xlu1 %v2016_v35, %s2676_s1 }
0x11b9   :  { %v2019_v36 = vpop.permute.xlu1 %2018 }
0x11ba   :  { %v2022_v37 = vsel %vm2021_vm1, %v2019_v36, 0.0 }
0x11bb   :  { %2023 = vadd.xlane.f32.xlu0 %v2022_v37 }
0x1248   :  { %v2024_v26 = vpop.xlane.xlu0 %2023 }
0x1249   :  { %v2032_v28 = vadd.f32 %v2098_v19, %v2024_v26 }
0x124b   :  { %2034 = vst.msk [vmem:[%s3240_s8] sm:$0x3] %vm2033_vm2, %v2032_v28 }
0x124c   :  { %2039 = vsyncpa [#allocation5], 1 }
0x124d   :  { %2040 = vsyncpa [#allocation7], 1 }

</bundles_post_ra>
